<compile_context>
chip_gen: v7x
topology: tpu7x:2x2x1
jax: 0.10.0
libtpu: 0.0.40
codegen_flags: <defaults>
</compile_context>

<pallas_src>
import math

import jax
import jax.numpy as jnp
from jax import lax
from jax.experimental import pallas as pl
from jax.experimental.pallas import tpu as pltpu

INPUT_SIZE = 6
INPUT_PAD = 8            # feature dim padded to 8 sublanes for the input matmul
HID = 32
G3 = 3 * HID             # 96: fused [r|z|n] gate width
NUM_HEADS = 2
HEAD_DIM = HID // NUM_HEADS
NUM_LAYERS = 2
SEQ_LEN = 8
BATCH = 2
LANES = 128

# ----------------------------- slab layout (static) ----------------------------- #
# One lane-dense (176, 128) f32 slab holds every weight / bias.
ROW_WIH0 = 0      # rows   0: 32  lanes 0:96  fused W_ih layer 0 (transposed, [r|z|n])
ROW_WHH0 = 32     # rows  32: 64  lanes 0:96  fused W_hh layer 0
ROW_WIH1 = 64     # rows  64: 96  lanes 0:96  fused W_ih layer 1
ROW_WHH1 = 96     # rows  96:128  lanes 0:96  fused W_hh layer 1
ROW_ATT = 128     # rows 128:160  lanes [0:32 WqT | 32:64 WkT | 64:96 WvT | 96:128 WoT]
ROW_NET = 160     # rows 160:168  lanes 0:32  net_w.T (only first 6 rows nonzero)
ROW_BIAS = 168    # rows 168:176  bias rows (see pack_params)
SLAB_ROWS = 176


# ------------------------------------- kernel ------------------------------------ #
def _alstm2_kernel(x_ref, slab_ref, out_ref, rnn_ref):
    T, B, H = SEQ_LEN, BATCH, HID
    f32 = jnp.float32

    def mm(a, b):
        return jnp.dot(a, b, preferred_element_type=f32)

    # ---- weights: full 128-lane blocks (unused lanes are exact zeros) ----
    w_ih0 = slab_ref[ROW_WIH0:ROW_WIH0 + H, :]        # (32, 128)
    w_hh0 = slab_ref[ROW_WHH0:ROW_WHH0 + H, :]
    w_ih1 = slab_ref[ROW_WIH1:ROW_WIH1 + H, :]
    w_hh1 = slab_ref[ROW_WHH1:ROW_WHH1 + H, :]
    w_att = slab_ref[ROW_ATT:ROW_ATT + H, :]          # (32, 128): [WqT|WkT|WvT|WoT]
    w_net = slab_ref[ROW_NET:ROW_NET + INPUT_PAD, :][:, 0:H]   # (8, 32)
    bias = slab_ref[ROW_BIAS:ROW_BIAS + 8, :]         # (8, 128)

    b_i0 = bias[0:1, :]          # [b_ir+b_hr | b_iz+b_hz | b_in | 0]   layer 0
    b_h0 = bias[1:2, :]          # [0 | 0 | b_hn | 0]                   layer 0
    b_i1 = bias[2:3, :]
    b_h1 = bias[3:4, :]
    b_qkv = bias[4:5, :]         # [b_q | b_k | b_v | 0]
    net_b = bias[5:6, 0:H]
    b_o = bias[5:6, H:2 * H]
    fc_w_rnn = bias[5:6, 2 * H:3 * H]
    fc_w_att = bias[5:6, 3 * H:4 * H]
    fc_b = bias[6:7, 0:1]        # (1, 1)

    # hoisted bias broadcasts for the recurrence (no per-step broadcast_in_dim)
    b_h0_b = jnp.broadcast_to(b_h0, (B, LANES))
    b_i1_b = jnp.broadcast_to(b_i1, (B, LANES))
    b_h1_b = jnp.broadcast_to(b_h1, (B, LANES))

    # ---- input Linear + hoisted layer-0 input projection (batched over T*B) ----
    xp = mm(x_ref[...], w_net) + net_b                        # (T*B, 32)
    gi0 = (mm(xp, w_ih0) + b_i0).reshape(T, B, LANES)         # (T, B, 128): [r|z|n|0]

    # ---- wavefront 2-layer GRU: one fused gate matmul per (layer, step) ----
    def gru_cell(gi, gh, h):
        rz = jax.nn.sigmoid(gi[:, 0:2 * H] + gh[:, 0:2 * H])  # fused r|z sigmoid (B, 64)
        r = rz[:, 0:H]
        z = rz[:, H:2 * H]
        n = jnp.tanh(gi[:, 2 * H:3 * H] + r * gh[:, 2 * H:3 * H])
        return (1.0 - z) * n + z * h

    h0 = jnp.zeros((B, H), f32)
    h1 = jnp.zeros((B, H), f32)
    for t in range(T):                                        # static unroll
        gh0 = mm(h0, w_hh0) + b_h0_b                          # (B, 128)
        h0 = gru_cell(gi0[t], gh0, h0)                        # layer-0 step t
        gi1 = mm(h0, w_ih1) + b_i1_b                          # layer-1 input proj (same t)
        gh1 = mm(h1, w_hh1) + b_h1_b
        h1 = gru_cell(gi1, gh1, h1)                           # layer-1 step t
        rnn_ref[t * B:(t + 1) * B, :] = h1                    # store rnn_out[t] (vst slot)

    rnn_flat = rnn_ref[...]                                   # (T*B, 32) time-major
    h_last = h1                                               # == rnn_out[:, -1, :]

    # ---- MultiheadAttention: one fused QKV projection, last-timestep query only ----
    proj = (mm(rnn_flat, w_att) + b_qkv).reshape(T, B, 4 * H)  # lanes: [q | k | v | junk]
    q = proj[T - 1][:, 0:H]                                    # (B, 32)
    k = proj[:, :, H:2 * H]                                    # (T, B, 32)
    v = proj[:, :, 2 * H:3 * H]                                # (T, B, 32)

    lane = lax.broadcasted_iota(jnp.int32, (1, H), 1)
    m0 = (lane < HEAD_DIM).astype(f32)                         # head-0 lane mask (1, 32)
    m1 = 1.0 - m0                                              # head-1 lane mask

    scale = 1.0 / math.sqrt(HEAD_DIM)
    qk = q[None, :, :] * k                                     # (T, B, 32)
    s0 = jnp.sum(qk * m0, axis=-1, keepdims=True) * scale      # (T, B, 1)
    s1 = jnp.sum(qk * m1, axis=-1, keepdims=True) * scale

    def softmax_time(s):                                       # softmax over the T axis
        s = s - jnp.max(s, axis=0, keepdims=True)
        e = jnp.exp(s)
        return e / jnp.sum(e, axis=0, keepdims=True)

    p0 = softmax_time(s0)
    p1 = softmax_time(s1)
    pw = p0 * m0 + p1 * m1                                     # (T, B, 32) per-lane weights
    ctx = jnp.sum(pw * v, axis=0)                              # (B, 32), heads in-place
    att_out = mm(ctx, w_att)[:, 3 * H:4 * H] + b_o             # (B, 32) out-projection

    # ---- fc_out on concat(h_last, att_out), as a fused row-dot ----
    feat_dot = h_last * fc_w_rnn + att_out * fc_w_att          # (B, 32)
    out_ref[...] = jnp.sum(feat_dot, axis=-1, keepdims=True) + fc_b


# ----------------------------- host-side param packing ----------------------------- #
def pack_params(p):
    """Pack PyTorch-style params into one lane-dense (SLAB_ROWS, 128) f32 slab."""
    H = HID
    f32 = jnp.float32
    slab = jnp.zeros((SLAB_ROWS, LANES), f32)

    def fused_w(w):  # (3H, H) -> (H, 3H): gate g (r,z,n) transposed into lanes g*H:(g+1)*H
        return jnp.concatenate([w[g * H:(g + 1) * H, :].T for g in range(3)], axis=1)

    slab = slab.at[ROW_WIH0:ROW_WIH0 + H, 0:G3].set(fused_w(p['w_ih0']))
    slab = slab.at[ROW_WHH0:ROW_WHH0 + H, 0:G3].set(fused_w(p['w_hh0']))
    slab = slab.at[ROW_WIH1:ROW_WIH1 + H, 0:G3].set(fused_w(p['w_ih1']))
    slab = slab.at[ROW_WHH1:ROW_WHH1 + H, 0:G3].set(fused_w(p['w_hh1']))

    wq = p['attn_in_w'][0:H, :]
    wk = p['attn_in_w'][H:2 * H, :]
    wv = p['attn_in_w'][2 * H:3 * H, :]
    slab = slab.at[ROW_ATT:ROW_ATT + H, 0:H].set(wq.T)
    slab = slab.at[ROW_ATT:ROW_ATT + H, H:2 * H].set(wk.T)
    slab = slab.at[ROW_ATT:ROW_ATT + H, 2 * H:3 * H].set(wv.T)
    slab = slab.at[ROW_ATT:ROW_ATT + H, 3 * H:4 * H].set(p['attn_out_w'].T)

    slab = slab.at[ROW_NET:ROW_NET + INPUT_SIZE, 0:H].set(p['net_w'].T)

    # bias rows
    for l in range(NUM_LAYERS):
        bih = p[f'b_ih{l}'][0]
        bhh = p[f'b_hh{l}'][0]
        bi_all = jnp.concatenate([bih[0:2 * H] + bhh[0:2 * H], bih[2 * H:3 * H]])
        bh_all = jnp.concatenate([jnp.zeros((2 * H,), f32), bhh[2 * H:3 * H]])
        slab = slab.at[ROW_BIAS + 2 * l + 0, 0:G3].set(bi_all)
        slab = slab.at[ROW_BIAS + 2 * l + 1, 0:G3].set(bh_all)
    slab = slab.at[ROW_BIAS + 4, 0:G3].set(p['attn_in_b'][0])          # [b_q|b_k|b_v]
    slab = slab.at[ROW_BIAS + 5, 0:H].set(p['net_b'][0])
    slab = slab.at[ROW_BIAS + 5, H:2 * H].set(p['attn_out_b'][0])
    slab = slab.at[ROW_BIAS + 5, 2 * H:3 * H].set(p['fc_w'][0, 0:H])
    slab = slab.at[ROW_BIAS + 5, 3 * H:4 * H].set(p['fc_w'][0, H:2 * H])
    slab = slab.at[ROW_BIAS + 6, 0].set(p['fc_b'][0, 0])

    assert slab.shape == (SLAB_ROWS, LANES), slab.shape
    return slab


@jax.jit
def alstm2_apply(x, slab):
    B, T, F = x.shape
    # time-major flatten + feature pad (cheap one-time XLA-side layout plumbing)
    x_tm = jnp.transpose(x, (1, 0, 2)).reshape(T * B, F)
    x_pad = jnp.zeros((T * B, INPUT_PAD), jnp.float32).at[:, :F].set(x_tm)

    vmem = pl.BlockSpec(memory_space=pltpu.MemorySpace.VMEM)
    out = pl.pallas_call(
        _alstm2_kernel,
        out_shape=jax.ShapeDtypeStruct((B, 1), jnp.float32),
        in_specs=[vmem, vmem],
        out_specs=vmem,
        scratch_shapes=[pltpu.VMEM((T * B, HID), jnp.float32)],   # rnn_out store buffer
    )(x_pad, slab)
    return out[:, 0]                 # .squeeze() of (B, 1) -> (B,)


def alstm2_forward(x, params):
    return alstm2_apply(x, pack_params(params))


# ------------------------------ parameter construction ------------------------------ #
def init_params(key):
    def uniform(key, shape, bound):
        return jax.random.uniform(key, shape, jnp.float32, -bound, bound)

    keys = jax.random.split(key, 20)
    ki = iter(keys)
    p = {}
    # nn.Linear(INPUT_SIZE, HID)
    b = 1.0 / math.sqrt(INPUT_SIZE)
    p['net_w'] = uniform(next(ki), (HID, INPUT_SIZE), b)
    p['net_b'] = uniform(next(ki), (1, HID), b)
    # GRU: 2 layers, input_size = hidden_size = HID
    b = 1.0 / math.sqrt(HID)
    for layer in (0, 1):
        p[f'w_ih{layer}'] = uniform(next(ki), (3 * HID, HID), b)
        p[f'w_hh{layer}'] = uniform(next(ki), (3 * HID, HID), b)
        p[f'b_ih{layer}'] = uniform(next(ki), (1, 3 * HID), b)
        p[f'b_hh{layer}'] = uniform(next(ki), (1, 3 * HID), b)
    # MultiheadAttention(HID, 2)
    b = 1.0 / math.sqrt(HID)
    p['attn_in_w'] = uniform(next(ki), (3 * HID, HID), b)
    p['attn_in_b'] = uniform(next(ki), (1, 3 * HID), b)
    p['attn_out_w'] = uniform(next(ki), (HID, HID), b)
    p['attn_out_b'] = uniform(next(ki), (1, HID), b)
    # fc_out: Linear(2*HID, 1)
    b = 1.0 / math.sqrt(2 * HID)
    p['fc_w'] = uniform(next(ki), (1, 2 * HID), b)
    p['fc_b'] = uniform(next(ki), (1, 1), b)
    return p


# -------------------------------- pure-JAX reference -------------------------------- #
def reference_forward(x, p):
    B, T, _ = x.shape
    H = HID
    xp = jnp.einsum('btf,hf->bth', x, p['net_w']) + p['net_b'][0]

    def gru_layer(seq, w_ih, w_hh, b_ih, b_hh):
        h = jnp.zeros((B, H), jnp.float32)
        outs = []
        for t in range(T):
            gi = seq[:, t, :] @ w_ih.T + b_ih[0]
            gh = h @ w_hh.T + b_hh[0]
            r = jax.nn.sigmoid(gi[:, :H] + gh[:, :H])
            z = jax.nn.sigmoid(gi[:, H:2 * H] + gh[:, H:2 * H])
            n = jnp.tanh(gi[:, 2 * H:] + r * gh[:, 2 * H:])
            h = (1 - z) * n + z * h
            outs.append(h)
        return jnp.stack(outs, axis=1)

    l0 = gru_layer(xp, p['w_ih0'], p['w_hh0'], p['b_ih0'], p['b_hh0'])
    rnn_out = gru_layer(l0, p['w_ih1'], p['w_hh1'], p['b_ih1'], p['b_hh1'])

    qkv = jnp.einsum('bth,gh->btg', rnn_out, p['attn_in_w']) + p['attn_in_b'][0]
    q, k, v = qkv[..., :H], qkv[..., H:2 * H], qkv[..., 2 * H:]
    hd = H // NUM_HEADS
    ctxs = []
    for hi in range(NUM_HEADS):
        sl = slice(hi * hd, (hi + 1) * hd)
        s = jnp.einsum('bqd,bkd->bqk', q[..., sl], k[..., sl]) / math.sqrt(hd)
        a = jax.nn.softmax(s, axis=-1)
        ctxs.append(jnp.einsum('bqk,bkd->bqd', a, v[..., sl]))
    ctx = jnp.concatenate(ctxs, axis=-1)
    out_att = jnp.einsum('bth,oh->bto', ctx, p['attn_out_w']) + p['attn_out_b'][0]

    feat = jnp.concatenate([rnn_out[:, -1, :], out_att[:, -1, :]], axis=1)
    return (feat @ p['fc_w'].T + p['fc_b'][0])[:, 0]


if __name__ == "__main__":
    key = jax.random.PRNGKey(0)
    k_x, k_p = jax.random.split(key)
    x = jax.random.normal(k_x, (BATCH, SEQ_LEN, INPUT_SIZE), jnp.float32)
    params = init_params(k_p)

    slab = pack_params(params)                 # one-time host-side packing
    out = jax.block_until_ready(alstm2_apply(x, slab))

    ref = jax.block_until_ready(reference_forward(x, params))
    assert out.shape == (BATCH,)
    assert jnp.allclose(out, ref, atol=1e-4, rtol=1e-4), (out, ref)
    print("KERNEL_OK")
</pallas_src>

<mosaic_0001>
module attributes {stable_mosaic.version = 11 : i64} {
  func.func @_alstm2_kernel(%arg0: memref<16x8xf32, #tpu.memory_space<vmem>>, %arg1: memref<176x128xf32, #tpu.memory_space<vmem>>, %arg2: memref<2x1xf32, #tpu.memory_space<vmem>>, %arg3: memref<16x32xf32, #tpu.memory_space<vmem>>) attributes {dimension_semantics = [], scalar_prefetch = 0 : i64, scratch_operands = 1 : i64, tpu.core_type = #tpu.core_type<tc>} {
    %c0 = arith.constant 0 : index
    %c0_0 = arith.constant 0 : index
    %0 = vector.load %arg1[%c0, %c0_0] : memref<176x128xf32, #tpu.memory_space<vmem>>, vector<32x128xf32>
    %c32 = arith.constant 32 : index
    %c0_1 = arith.constant 0 : index
    %1 = vector.load %arg1[%c32, %c0_1] : memref<176x128xf32, #tpu.memory_space<vmem>>, vector<32x128xf32>
    %c64 = arith.constant 64 : index
    %c0_2 = arith.constant 0 : index
    %2 = vector.load %arg1[%c64, %c0_2] : memref<176x128xf32, #tpu.memory_space<vmem>>, vector<32x128xf32>
    %c96 = arith.constant 96 : index
    %c0_3 = arith.constant 0 : index
    %3 = vector.load %arg1[%c96, %c0_3] : memref<176x128xf32, #tpu.memory_space<vmem>>, vector<32x128xf32>
    %c128 = arith.constant 128 : index
    %c0_4 = arith.constant 0 : index
    %4 = vector.load %arg1[%c128, %c0_4] : memref<176x128xf32, #tpu.memory_space<vmem>>, vector<32x128xf32>
    %c160 = arith.constant 160 : index
    %c0_5 = arith.constant 0 : index
    %5 = vector.load %arg1[%c160, %c0_5] : memref<176x128xf32, #tpu.memory_space<vmem>>, vector<8x128xf32>
    %6 = vector.extract_strided_slice %5 {offsets = [0, 0], sizes = [8, 32], strides = [1, 1]} : vector<8x128xf32> to vector<8x32xf32>
    %c168 = arith.constant 168 : index
    %c0_6 = arith.constant 0 : index
    %7 = vector.load %arg1[%c168, %c0_6] : memref<176x128xf32, #tpu.memory_space<vmem>>, vector<8x128xf32>
    %8 = vector.extract_strided_slice %7 {offsets = [0, 0], sizes = [1, 128], strides = [1, 1]} : vector<8x128xf32> to vector<1x128xf32>
    %9 = vector.extract_strided_slice %7 {offsets = [1, 0], sizes = [1, 128], strides = [1, 1]} : vector<8x128xf32> to vector<1x128xf32>
    %10 = vector.extract_strided_slice %7 {offsets = [2, 0], sizes = [1, 128], strides = [1, 1]} : vector<8x128xf32> to vector<1x128xf32>
    %11 = vector.extract_strided_slice %7 {offsets = [3, 0], sizes = [1, 128], strides = [1, 1]} : vector<8x128xf32> to vector<1x128xf32>
    %12 = vector.extract_strided_slice %7 {offsets = [4, 0], sizes = [1, 128], strides = [1, 1]} : vector<8x128xf32> to vector<1x128xf32>
    %13 = vector.extract_strided_slice %7 {offsets = [5, 0], sizes = [1, 32], strides = [1, 1]} : vector<8x128xf32> to vector<1x32xf32>
    %14 = vector.extract_strided_slice %7 {offsets = [5, 32], sizes = [1, 32], strides = [1, 1]} : vector<8x128xf32> to vector<1x32xf32>
    %15 = vector.extract_strided_slice %7 {offsets = [5, 64], sizes = [1, 32], strides = [1, 1]} : vector<8x128xf32> to vector<1x32xf32>
    %16 = vector.extract_strided_slice %7 {offsets = [5, 96], sizes = [1, 32], strides = [1, 1]} : vector<8x128xf32> to vector<1x32xf32>
    %17 = vector.extract_strided_slice %7 {offsets = [6, 0], sizes = [1, 1], strides = [1, 1]} : vector<8x128xf32> to vector<1x1xf32>
    %18 = vector.shape_cast %9 : vector<1x128xf32> to vector<1x128xf32>
    %19 = vector.broadcast %18 : vector<1x128xf32> to vector<2x128xf32>
    %20 = vector.shape_cast %10 : vector<1x128xf32> to vector<1x128xf32>
    %21 = vector.broadcast %20 : vector<1x128xf32> to vector<2x128xf32>
    %22 = vector.shape_cast %11 : vector<1x128xf32> to vector<1x128xf32>
    %23 = vector.broadcast %22 : vector<1x128xf32> to vector<2x128xf32>
    %c0_7 = arith.constant 0 : index
    %c0_8 = arith.constant 0 : index
    %24 = vector.load %arg0[%c0_7, %c0_8] : memref<16x8xf32, #tpu.memory_space<vmem>>, vector<16x8xf32>
    %cst = arith.constant dense<0.000000e+00> : vector<16x32xf32>
    %25 = tpu.matmul %24, %6, %cst {dimension_numbers = #tpu.dot_dimension_numbers<[1], [0], [0], [1], [0, 0, 1, 1], [], []>} : vector<16x8xf32>, vector<8x32xf32>, vector<16x32xf32> -> vector<16x32xf32>
    %26 = vector.broadcast %13 : vector<1x32xf32> to vector<16x32xf32>
    %27 = arith.addf %25, %26 : vector<16x32xf32>
    %cst_9 = arith.constant dense<0.000000e+00> : vector<16x128xf32>
    %28 = tpu.matmul %27, %0, %cst_9 {dimension_numbers = #tpu.dot_dimension_numbers<[1], [0], [0], [1], [0, 0, 1, 1], [], []>} : vector<16x32xf32>, vector<32x128xf32>, vector<16x128xf32> -> vector<16x128xf32>
    %29 = vector.broadcast %8 : vector<1x128xf32> to vector<16x128xf32>
    %30 = arith.addf %28, %29 : vector<16x128xf32>
    %31 = vector.shape_cast %30 : vector<16x128xf32> to vector<8x2x128xf32>
    %cst_10 = arith.constant 0.000000e+00 : f32
    %32 = vector.broadcast %cst_10 : f32 to vector<2x32xf32>
    %cst_11 = arith.constant 0.000000e+00 : f32
    %33 = vector.broadcast %cst_11 : f32 to vector<2x32xf32>
    %cst_12 = arith.constant dense<0.000000e+00> : vector<2x128xf32>
    %34 = tpu.matmul %32, %1, %cst_12 {dimension_numbers = #tpu.dot_dimension_numbers<[1], [0], [0], [1], [0, 0, 1, 1], [], []>} : vector<2x32xf32>, vector<32x128xf32>, vector<2x128xf32> -> vector<2x128xf32>
    %35 = arith.addf %34, %19 : vector<2x128xf32>
    %36 = vector.extract_strided_slice %31 {offsets = [0, 0, 0], sizes = [1, 2, 128], strides = [1, 1, 1]} : vector<8x2x128xf32> to vector<1x2x128xf32>
    %37 = vector.shape_cast %36 : vector<1x2x128xf32> to vector<2x128xf32>
    %38 = vector.extract_strided_slice %37 {offsets = [0, 0], sizes = [2, 64], strides = [1, 1]} : vector<2x128xf32> to vector<2x64xf32>
    %39 = vector.extract_strided_slice %35 {offsets = [0, 0], sizes = [2, 64], strides = [1, 1]} : vector<2x128xf32> to vector<2x64xf32>
    %40 = arith.addf %38, %39 : vector<2x64xf32>
    %41 = arith.negf %40 : vector<2x64xf32>
    %42 = math.exp %41 : vector<2x64xf32>
    %cst_13 = arith.constant 1.000000e+00 : f32
    %43 = vector.broadcast %cst_13 : f32 to vector<2x64xf32>
    %44 = arith.addf %43, %42 : vector<2x64xf32>
    %45 = arith.divf %43, %44 : vector<2x64xf32>
    %46 = vector.extract_strided_slice %45 {offsets = [0, 0], sizes = [2, 32], strides = [1, 1]} : vector<2x64xf32> to vector<2x32xf32>
    %47 = vector.extract_strided_slice %45 {offsets = [0, 32], sizes = [2, 32], strides = [1, 1]} : vector<2x64xf32> to vector<2x32xf32>
    %48 = vector.extract_strided_slice %37 {offsets = [0, 64], sizes = [2, 32], strides = [1, 1]} : vector<2x128xf32> to vector<2x32xf32>
    %49 = vector.extract_strided_slice %35 {offsets = [0, 64], sizes = [2, 32], strides = [1, 1]} : vector<2x128xf32> to vector<2x32xf32>
    %50 = arith.mulf %46, %49 : vector<2x32xf32>
    %51 = arith.addf %48, %50 : vector<2x32xf32>
    %52 = math.tanh %51 : vector<2x32xf32>
    %cst_14 = arith.constant 1.000000e+00 : f32
    %53 = vector.broadcast %cst_14 : f32 to vector<2x32xf32>
    %54 = arith.subf %53, %47 : vector<2x32xf32>
    %55 = arith.mulf %54, %52 : vector<2x32xf32>
    %56 = arith.mulf %47, %32 : vector<2x32xf32>
    %57 = arith.addf %55, %56 : vector<2x32xf32>
    %cst_15 = arith.constant dense<0.000000e+00> : vector<2x128xf32>
    %58 = tpu.matmul %57, %2, %cst_15 {dimension_numbers = #tpu.dot_dimension_numbers<[1], [0], [0], [1], [0, 0, 1, 1], [], []>} : vector<2x32xf32>, vector<32x128xf32>, vector<2x128xf32> -> vector<2x128xf32>
    %59 = arith.addf %58, %21 : vector<2x128xf32>
    %cst_16 = arith.constant dense<0.000000e+00> : vector<2x128xf32>
    %60 = tpu.matmul %33, %3, %cst_16 {dimension_numbers = #tpu.dot_dimension_numbers<[1], [0], [0], [1], [0, 0, 1, 1], [], []>} : vector<2x32xf32>, vector<32x128xf32>, vector<2x128xf32> -> vector<2x128xf32>
    %61 = arith.addf %60, %23 : vector<2x128xf32>
    %62 = vector.extract_strided_slice %59 {offsets = [0, 0], sizes = [2, 64], strides = [1, 1]} : vector<2x128xf32> to vector<2x64xf32>
    %63 = vector.extract_strided_slice %61 {offsets = [0, 0], sizes = [2, 64], strides = [1, 1]} : vector<2x128xf32> to vector<2x64xf32>
    %64 = arith.addf %62, %63 : vector<2x64xf32>
    %65 = arith.negf %64 : vector<2x64xf32>
    %66 = math.exp %65 : vector<2x64xf32>
    %cst_17 = arith.constant 1.000000e+00 : f32
    %67 = vector.broadcast %cst_17 : f32 to vector<2x64xf32>
    %68 = arith.addf %67, %66 : vector<2x64xf32>
    %69 = arith.divf %67, %68 : vector<2x64xf32>
    %70 = vector.extract_strided_slice %69 {offsets = [0, 0], sizes = [2, 32], strides = [1, 1]} : vector<2x64xf32> to vector<2x32xf32>
    %71 = vector.extract_strided_slice %69 {offsets = [0, 32], sizes = [2, 32], strides = [1, 1]} : vector<2x64xf32> to vector<2x32xf32>
    %72 = vector.extract_strided_slice %59 {offsets = [0, 64], sizes = [2, 32], strides = [1, 1]} : vector<2x128xf32> to vector<2x32xf32>
    %73 = vector.extract_strided_slice %61 {offsets = [0, 64], sizes = [2, 32], strides = [1, 1]} : vector<2x128xf32> to vector<2x32xf32>
    %74 = arith.mulf %70, %73 : vector<2x32xf32>
    %75 = arith.addf %72, %74 : vector<2x32xf32>
    %76 = math.tanh %75 : vector<2x32xf32>
    %cst_18 = arith.constant 1.000000e+00 : f32
    %77 = vector.broadcast %cst_18 : f32 to vector<2x32xf32>
    %78 = arith.subf %77, %71 : vector<2x32xf32>
    %79 = arith.mulf %78, %76 : vector<2x32xf32>
    %80 = arith.mulf %71, %33 : vector<2x32xf32>
    %81 = arith.addf %79, %80 : vector<2x32xf32>
    %c0_19 = arith.constant 0 : index
    %c0_20 = arith.constant 0 : index
    %82 = vector.load %arg3[%c0_19, %c0_20] : memref<16x32xf32, #tpu.memory_space<vmem>>, vector<2x32xf32>
    tpu.vector_store %arg3[%c0_19, %c0_20], %81 {strides = array<i32>} : memref<16x32xf32, #tpu.memory_space<vmem>>, vector<2x32xf32>,
    %cst_21 = arith.constant dense<0.000000e+00> : vector<2x128xf32>
    %83 = tpu.matmul %57, %1, %cst_21 {dimension_numbers = #tpu.dot_dimension_numbers<[1], [0], [0], [1], [0, 0, 1, 1], [], []>} : vector<2x32xf32>, vector<32x128xf32>, vector<2x128xf32> -> vector<2x128xf32>
    %84 = arith.addf %83, %19 : vector<2x128xf32>
    %85 = vector.extract_strided_slice %31 {offsets = [1, 0, 0], sizes = [1, 2, 128], strides = [1, 1, 1]} : vector<8x2x128xf32> to vector<1x2x128xf32>
    %86 = vector.shape_cast %85 : vector<1x2x128xf32> to vector<2x128xf32>
    %87 = vector.extract_strided_slice %86 {offsets = [0, 0], sizes = [2, 64], strides = [1, 1]} : vector<2x128xf32> to vector<2x64xf32>
    %88 = vector.extract_strided_slice %84 {offsets = [0, 0], sizes = [2, 64], strides = [1, 1]} : vector<2x128xf32> to vector<2x64xf32>
    %89 = arith.addf %87, %88 : vector<2x64xf32>
    %90 = arith.negf %89 : vector<2x64xf32>
    %91 = math.exp %90 : vector<2x64xf32>
    %cst_22 = arith.constant 1.000000e+00 : f32
    %92 = vector.broadcast %cst_22 : f32 to vector<2x64xf32>
    %93 = arith.addf %92, %91 : vector<2x64xf32>
    %94 = arith.divf %92, %93 : vector<2x64xf32>
    %95 = vector.extract_strided_slice %94 {offsets = [0, 0], sizes = [2, 32], strides = [1, 1]} : vector<2x64xf32> to vector<2x32xf32>
    %96 = vector.extract_strided_slice %94 {offsets = [0, 32], sizes = [2, 32], strides = [1, 1]} : vector<2x64xf32> to vector<2x32xf32>
    %97 = vector.extract_strided_slice %86 {offsets = [0, 64], sizes = [2, 32], strides = [1, 1]} : vector<2x128xf32> to vector<2x32xf32>
    %98 = vector.extract_strided_slice %84 {offsets = [0, 64], sizes = [2, 32], strides = [1, 1]} : vector<2x128xf32> to vector<2x32xf32>
    %99 = arith.mulf %95, %98 : vector<2x32xf32>
    %100 = arith.addf %97, %99 : vector<2x32xf32>
    %101 = math.tanh %100 : vector<2x32xf32>
    %cst_23 = arith.constant 1.000000e+00 : f32
    %102 = vector.broadcast %cst_23 : f32 to vector<2x32xf32>
    %103 = arith.subf %102, %96 : vector<2x32xf32>
    %104 = arith.mulf %103, %101 : vector<2x32xf32>
    %105 = arith.mulf %96, %57 : vector<2x32xf32>
    %106 = arith.addf %104, %105 : vector<2x32xf32>
    %cst_24 = arith.constant dense<0.000000e+00> : vector<2x128xf32>
    %107 = tpu.matmul %106, %2, %cst_24 {dimension_numbers = #tpu.dot_dimension_numbers<[1], [0], [0], [1], [0, 0, 1, 1], [], []>} : vector<2x32xf32>, vector<32x128xf32>, vector<2x128xf32> -> vector<2x128xf32>
    %108 = arith.addf %107, %21 : vector<2x128xf32>
    %cst_25 = arith.constant dense<0.000000e+00> : vector<2x128xf32>
    %109 = tpu.matmul %81, %3, %cst_25 {dimension_numbers = #tpu.dot_dimension_numbers<[1], [0], [0], [1], [0, 0, 1, 1], [], []>} : vector<2x32xf32>, vector<32x128xf32>, vector<2x128xf32> -> vector<2x128xf32>
    %110 = arith.addf %109, %23 : vector<2x128xf32>
    %111 = vector.extract_strided_slice %108 {offsets = [0, 0], sizes = [2, 64], strides = [1, 1]} : vector<2x128xf32> to vector<2x64xf32>
    %112 = vector.extract_strided_slice %110 {offsets = [0, 0], sizes = [2, 64], strides = [1, 1]} : vector<2x128xf32> to vector<2x64xf32>
    %113 = arith.addf %111, %112 : vector<2x64xf32>
    %114 = arith.negf %113 : vector<2x64xf32>
    %115 = math.exp %114 : vector<2x64xf32>
    %cst_26 = arith.constant 1.000000e+00 : f32
    %116 = vector.broadcast %cst_26 : f32 to vector<2x64xf32>
    %117 = arith.addf %116, %115 : vector<2x64xf32>
    %118 = arith.divf %116, %117 : vector<2x64xf32>
    %119 = vector.extract_strided_slice %118 {offsets = [0, 0], sizes = [2, 32], strides = [1, 1]} : vector<2x64xf32> to vector<2x32xf32>
    %120 = vector.extract_strided_slice %118 {offsets = [0, 32], sizes = [2, 32], strides = [1, 1]} : vector<2x64xf32> to vector<2x32xf32>
    %121 = vector.extract_strided_slice %108 {offsets = [0, 64], sizes = [2, 32], strides = [1, 1]} : vector<2x128xf32> to vector<2x32xf32>
    %122 = vector.extract_strided_slice %110 {offsets = [0, 64], sizes = [2, 32], strides = [1, 1]} : vector<2x128xf32> to vector<2x32xf32>
    %123 = arith.mulf %119, %122 : vector<2x32xf32>
    %124 = arith.addf %121, %123 : vector<2x32xf32>
    %125 = math.tanh %124 : vector<2x32xf32>
    %cst_27 = arith.constant 1.000000e+00 : f32
    %126 = vector.broadcast %cst_27 : f32 to vector<2x32xf32>
    %127 = arith.subf %126, %120 : vector<2x32xf32>
    %128 = arith.mulf %127, %125 : vector<2x32xf32>
    %129 = arith.mulf %120, %81 : vector<2x32xf32>
    %130 = arith.addf %128, %129 : vector<2x32xf32>
    %c2 = arith.constant 2 : index
    %c0_28 = arith.constant 0 : index
    %131 = vector.load %arg3[%c2, %c0_28] : memref<16x32xf32, #tpu.memory_space<vmem>>, vector<2x32xf32>
    tpu.vector_store %arg3[%c2, %c0_28], %130 {strides = array<i32>} : memref<16x32xf32, #tpu.memory_space<vmem>>, vector<2x32xf32>,
    %cst_29 = arith.constant dense<0.000000e+00> : vector<2x128xf32>
    %132 = tpu.matmul %106, %1, %cst_29 {dimension_numbers = #tpu.dot_dimension_numbers<[1], [0], [0], [1], [0, 0, 1, 1], [], []>} : vector<2x32xf32>, vector<32x128xf32>, vector<2x128xf32> -> vector<2x128xf32>
    %133 = arith.addf %132, %19 : vector<2x128xf32>
    %134 = vector.extract_strided_slice %31 {offsets = [2, 0, 0], sizes = [1, 2, 128], strides = [1, 1, 1]} : vector<8x2x128xf32> to vector<1x2x128xf32>
    %135 = vector.shape_cast %134 : vector<1x2x128xf32> to vector<2x128xf32>
    %136 = vector.extract_strided_slice %135 {offsets = [0, 0], sizes = [2, 64], strides = [1, 1]} : vector<2x128xf32> to vector<2x64xf32>
    %137 = vector.extract_strided_slice %133 {offsets = [0, 0], sizes = [2, 64], strides = [1, 1]} : vector<2x128xf32> to vector<2x64xf32>
    %138 = arith.addf %136, %137 : vector<2x64xf32>
    %139 = arith.negf %138 : vector<2x64xf32>
    %140 = math.exp %139 : vector<2x64xf32>
    %cst_30 = arith.constant 1.000000e+00 : f32
    %141 = vector.broadcast %cst_30 : f32 to vector<2x64xf32>
    %142 = arith.addf %141, %140 : vector<2x64xf32>
    %143 = arith.divf %141, %142 : vector<2x64xf32>
    %144 = vector.extract_strided_slice %143 {offsets = [0, 0], sizes = [2, 32], strides = [1, 1]} : vector<2x64xf32> to vector<2x32xf32>
    %145 = vector.extract_strided_slice %143 {offsets = [0, 32], sizes = [2, 32], strides = [1, 1]} : vector<2x64xf32> to vector<2x32xf32>
    %146 = vector.extract_strided_slice %135 {offsets = [0, 64], sizes = [2, 32], strides = [1, 1]} : vector<2x128xf32> to vector<2x32xf32>
    %147 = vector.extract_strided_slice %133 {offsets = [0, 64], sizes = [2, 32], strides = [1, 1]} : vector<2x128xf32> to vector<2x32xf32>
    %148 = arith.mulf %144, %147 : vector<2x32xf32>
    %149 = arith.addf %146, %148 : vector<2x32xf32>
    %150 = math.tanh %149 : vector<2x32xf32>
    %cst_31 = arith.constant 1.000000e+00 : f32
    %151 = vector.broadcast %cst_31 : f32 to vector<2x32xf32>
    %152 = arith.subf %151, %145 : vector<2x32xf32>
    %153 = arith.mulf %152, %150 : vector<2x32xf32>
    %154 = arith.mulf %145, %106 : vector<2x32xf32>
    %155 = arith.addf %153, %154 : vector<2x32xf32>
    %cst_32 = arith.constant dense<0.000000e+00> : vector<2x128xf32>
    %156 = tpu.matmul %155, %2, %cst_32 {dimension_numbers = #tpu.dot_dimension_numbers<[1], [0], [0], [1], [0, 0, 1, 1], [], []>} : vector<2x32xf32>, vector<32x128xf32>, vector<2x128xf32> -> vector<2x128xf32>
    %157 = arith.addf %156, %21 : vector<2x128xf32>
    %cst_33 = arith.constant dense<0.000000e+00> : vector<2x128xf32>
    %158 = tpu.matmul %130, %3, %cst_33 {dimension_numbers = #tpu.dot_dimension_numbers<[1], [0], [0], [1], [0, 0, 1, 1], [], []>} : vector<2x32xf32>, vector<32x128xf32>, vector<2x128xf32> -> vector<2x128xf32>
    %159 = arith.addf %158, %23 : vector<2x128xf32>
    %160 = vector.extract_strided_slice %157 {offsets = [0, 0], sizes = [2, 64], strides = [1, 1]} : vector<2x128xf32> to vector<2x64xf32>
    %161 = vector.extract_strided_slice %159 {offsets = [0, 0], sizes = [2, 64], strides = [1, 1]} : vector<2x128xf32> to vector<2x64xf32>
    %162 = arith.addf %160, %161 : vector<2x64xf32>
    %163 = arith.negf %162 : vector<2x64xf32>
    %164 = math.exp %163 : vector<2x64xf32>
    %cst_34 = arith.constant 1.000000e+00 : f32
    %165 = vector.broadcast %cst_34 : f32 to vector<2x64xf32>
    %166 = arith.addf %165, %164 : vector<2x64xf32>
    %167 = arith.divf %165, %166 : vector<2x64xf32>
    %168 = vector.extract_strided_slice %167 {offsets = [0, 0], sizes = [2, 32], strides = [1, 1]} : vector<2x64xf32> to vector<2x32xf32>
    %169 = vector.extract_strided_slice %167 {offsets = [0, 32], sizes = [2, 32], strides = [1, 1]} : vector<2x64xf32> to vector<2x32xf32>
    %170 = vector.extract_strided_slice %157 {offsets = [0, 64], sizes = [2, 32], strides = [1, 1]} : vector<2x128xf32> to vector<2x32xf32>
    %171 = vector.extract_strided_slice %159 {offsets = [0, 64], sizes = [2, 32], strides = [1, 1]} : vector<2x128xf32> to vector<2x32xf32>
    %172 = arith.mulf %168, %171 : vector<2x32xf32>
    %173 = arith.addf %170, %172 : vector<2x32xf32>
    %174 = math.tanh %173 : vector<2x32xf32>
    %cst_35 = arith.constant 1.000000e+00 : f32
    %175 = vector.broadcast %cst_35 : f32 to vector<2x32xf32>
    %176 = arith.subf %175, %169 : vector<2x32xf32>
    %177 = arith.mulf %176, %174 : vector<2x32xf32>
    %178 = arith.mulf %169, %130 : vector<2x32xf32>
    %179 = arith.addf %177, %178 : vector<2x32xf32>
    %c4 = arith.constant 4 : index
    %c0_36 = arith.constant 0 : index
    %180 = vector.load %arg3[%c4, %c0_36] : memref<16x32xf32, #tpu.memory_space<vmem>>, vector<2x32xf32>
    tpu.vector_store %arg3[%c4, %c0_36], %179 {strides = array<i32>} : memref<16x32xf32, #tpu.memory_space<vmem>>, vector<2x32xf32>,
    %cst_37 = arith.constant dense<0.000000e+00> : vector<2x128xf32>
    %181 = tpu.matmul %155, %1, %cst_37 {dimension_numbers = #tpu.dot_dimension_numbers<[1], [0], [0], [1], [0, 0, 1, 1], [], []>} : vector<2x32xf32>, vector<32x128xf32>, vector<2x128xf32> -> vector<2x128xf32>
    %182 = arith.addf %181, %19 : vector<2x128xf32>
    %183 = vector.extract_strided_slice %31 {offsets = [3, 0, 0], sizes = [1, 2, 128], strides = [1, 1, 1]} : vector<8x2x128xf32> to vector<1x2x128xf32>
    %184 = vector.shape_cast %183 : vector<1x2x128xf32> to vector<2x128xf32>
    %185 = vector.extract_strided_slice %184 {offsets = [0, 0], sizes = [2, 64], strides = [1, 1]} : vector<2x128xf32> to vector<2x64xf32>
    %186 = vector.extract_strided_slice %182 {offsets = [0, 0], sizes = [2, 64], strides = [1, 1]} : vector<2x128xf32> to vector<2x64xf32>
    %187 = arith.addf %185, %186 : vector<2x64xf32>
    %188 = arith.negf %187 : vector<2x64xf32>
    %189 = math.exp %188 : vector<2x64xf32>
    %cst_38 = arith.constant 1.000000e+00 : f32
    %190 = vector.broadcast %cst_38 : f32 to vector<2x64xf32>
    %191 = arith.addf %190, %189 : vector<2x64xf32>
    %192 = arith.divf %190, %191 : vector<2x64xf32>
    %193 = vector.extract_strided_slice %192 {offsets = [0, 0], sizes = [2, 32], strides = [1, 1]} : vector<2x64xf32> to vector<2x32xf32>
    %194 = vector.extract_strided_slice %192 {offsets = [0, 32], sizes = [2, 32], strides = [1, 1]} : vector<2x64xf32> to vector<2x32xf32>
    %195 = vector.extract_strided_slice %184 {offsets = [0, 64], sizes = [2, 32], strides = [1, 1]} : vector<2x128xf32> to vector<2x32xf32>
    %196 = vector.extract_strided_slice %182 {offsets = [0, 64], sizes = [2, 32], strides = [1, 1]} : vector<2x128xf32> to vector<2x32xf32>
    %197 = arith.mulf %193, %196 : vector<2x32xf32>
    %198 = arith.addf %195, %197 : vector<2x32xf32>
    %199 = math.tanh %198 : vector<2x32xf32>
    %cst_39 = arith.constant 1.000000e+00 : f32
    %200 = vector.broadcast %cst_39 : f32 to vector<2x32xf32>
    %201 = arith.subf %200, %194 : vector<2x32xf32>
    %202 = arith.mulf %201, %199 : vector<2x32xf32>
    %203 = arith.mulf %194, %155 : vector<2x32xf32>
    %204 = arith.addf %202, %203 : vector<2x32xf32>
    %cst_40 = arith.constant dense<0.000000e+00> : vector<2x128xf32>
    %205 = tpu.matmul %204, %2, %cst_40 {dimension_numbers = #tpu.dot_dimension_numbers<[1], [0], [0], [1], [0, 0, 1, 1], [], []>} : vector<2x32xf32>, vector<32x128xf32>, vector<2x128xf32> -> vector<2x128xf32>
    %206 = arith.addf %205, %21 : vector<2x128xf32>
    %cst_41 = arith.constant dense<0.000000e+00> : vector<2x128xf32>
    %207 = tpu.matmul %179, %3, %cst_41 {dimension_numbers = #tpu.dot_dimension_numbers<[1], [0], [0], [1], [0, 0, 1, 1], [], []>} : vector<2x32xf32>, vector<32x128xf32>, vector<2x128xf32> -> vector<2x128xf32>
    %208 = arith.addf %207, %23 : vector<2x128xf32>
    %209 = vector.extract_strided_slice %206 {offsets = [0, 0], sizes = [2, 64], strides = [1, 1]} : vector<2x128xf32> to vector<2x64xf32>
    %210 = vector.extract_strided_slice %208 {offsets = [0, 0], sizes = [2, 64], strides = [1, 1]} : vector<2x128xf32> to vector<2x64xf32>
    %211 = arith.addf %209, %210 : vector<2x64xf32>
    %212 = arith.negf %211 : vector<2x64xf32>
    %213 = math.exp %212 : vector<2x64xf32>
    %cst_42 = arith.constant 1.000000e+00 : f32
    %214 = vector.broadcast %cst_42 : f32 to vector<2x64xf32>
    %215 = arith.addf %214, %213 : vector<2x64xf32>
    %216 = arith.divf %214, %215 : vector<2x64xf32>
    %217 = vector.extract_strided_slice %216 {offsets = [0, 0], sizes = [2, 32], strides = [1, 1]} : vector<2x64xf32> to vector<2x32xf32>
    %218 = vector.extract_strided_slice %216 {offsets = [0, 32], sizes = [2, 32], strides = [1, 1]} : vector<2x64xf32> to vector<2x32xf32>
    %219 = vector.extract_strided_slice %206 {offsets = [0, 64], sizes = [2, 32], strides = [1, 1]} : vector<2x128xf32> to vector<2x32xf32>
    %220 = vector.extract_strided_slice %208 {offsets = [0, 64], sizes = [2, 32], strides = [1, 1]} : vector<2x128xf32> to vector<2x32xf32>
    %221 = arith.mulf %217, %220 : vector<2x32xf32>
    %222 = arith.addf %219, %221 : vector<2x32xf32>
    %223 = math.tanh %222 : vector<2x32xf32>
    %cst_43 = arith.constant 1.000000e+00 : f32
    %224 = vector.broadcast %cst_43 : f32 to vector<2x32xf32>
    %225 = arith.subf %224, %218 : vector<2x32xf32>
    %226 = arith.mulf %225, %223 : vector<2x32xf32>
    %227 = arith.mulf %218, %179 : vector<2x32xf32>
    %228 = arith.addf %226, %227 : vector<2x32xf32>
    %c6 = arith.constant 6 : index
    %c0_44 = arith.constant 0 : index
    %229 = vector.load %arg3[%c6, %c0_44] : memref<16x32xf32, #tpu.memory_space<vmem>>, vector<2x32xf32>
    tpu.vector_store %arg3[%c6, %c0_44], %228 {strides = array<i32>} : memref<16x32xf32, #tpu.memory_space<vmem>>, vector<2x32xf32>,
    %cst_45 = arith.constant dense<0.000000e+00> : vector<2x128xf32>
    %230 = tpu.matmul %204, %1, %cst_45 {dimension_numbers = #tpu.dot_dimension_numbers<[1], [0], [0], [1], [0, 0, 1, 1], [], []>} : vector<2x32xf32>, vector<32x128xf32>, vector<2x128xf32> -> vector<2x128xf32>
    %231 = arith.addf %230, %19 : vector<2x128xf32>
    %232 = vector.extract_strided_slice %31 {offsets = [4, 0, 0], sizes = [1, 2, 128], strides = [1, 1, 1]} : vector<8x2x128xf32> to vector<1x2x128xf32>
    %233 = vector.shape_cast %232 : vector<1x2x128xf32> to vector<2x128xf32>
    %234 = vector.extract_strided_slice %233 {offsets = [0, 0], sizes = [2, 64], strides = [1, 1]} : vector<2x128xf32> to vector<2x64xf32>
    %235 = vector.extract_strided_slice %231 {offsets = [0, 0], sizes = [2, 64], strides = [1, 1]} : vector<2x128xf32> to vector<2x64xf32>
    %236 = arith.addf %234, %235 : vector<2x64xf32>
    %237 = arith.negf %236 : vector<2x64xf32>
    %238 = math.exp %237 : vector<2x64xf32>
    %cst_46 = arith.constant 1.000000e+00 : f32
    %239 = vector.broadcast %cst_46 : f32 to vector<2x64xf32>
    %240 = arith.addf %239, %238 : vector<2x64xf32>
    %241 = arith.divf %239, %240 : vector<2x64xf32>
    %242 = vector.extract_strided_slice %241 {offsets = [0, 0], sizes = [2, 32], strides = [1, 1]} : vector<2x64xf32> to vector<2x32xf32>
    %243 = vector.extract_strided_slice %241 {offsets = [0, 32], sizes = [2, 32], strides = [1, 1]} : vector<2x64xf32> to vector<2x32xf32>
    %244 = vector.extract_strided_slice %233 {offsets = [0, 64], sizes = [2, 32], strides = [1, 1]} : vector<2x128xf32> to vector<2x32xf32>
    %245 = vector.extract_strided_slice %231 {offsets = [0, 64], sizes = [2, 32], strides = [1, 1]} : vector<2x128xf32> to vector<2x32xf32>
    %246 = arith.mulf %242, %245 : vector<2x32xf32>
    %247 = arith.addf %244, %246 : vector<2x32xf32>
    %248 = math.tanh %247 : vector<2x32xf32>
    %cst_47 = arith.constant 1.000000e+00 : f32
    %249 = vector.broadcast %cst_47 : f32 to vector<2x32xf32>
    %250 = arith.subf %249, %243 : vector<2x32xf32>
    %251 = arith.mulf %250, %248 : vector<2x32xf32>
    %252 = arith.mulf %243, %204 : vector<2x32xf32>
    %253 = arith.addf %251, %252 : vector<2x32xf32>
    %cst_48 = arith.constant dense<0.000000e+00> : vector<2x128xf32>
    %254 = tpu.matmul %253, %2, %cst_48 {dimension_numbers = #tpu.dot_dimension_numbers<[1], [0], [0], [1], [0, 0, 1, 1], [], []>} : vector<2x32xf32>, vector<32x128xf32>, vector<2x128xf32> -> vector<2x128xf32>
    %255 = arith.addf %254, %21 : vector<2x128xf32>
    %cst_49 = arith.constant dense<0.000000e+00> : vector<2x128xf32>
    %256 = tpu.matmul %228, %3, %cst_49 {dimension_numbers = #tpu.dot_dimension_numbers<[1], [0], [0], [1], [0, 0, 1, 1], [], []>} : vector<2x32xf32>, vector<32x128xf32>, vector<2x128xf32> -> vector<2x128xf32>
    %257 = arith.addf %256, %23 : vector<2x128xf32>
    %258 = vector.extract_strided_slice %255 {offsets = [0, 0], sizes = [2, 64], strides = [1, 1]} : vector<2x128xf32> to vector<2x64xf32>
    %259 = vector.extract_strided_slice %257 {offsets = [0, 0], sizes = [2, 64], strides = [1, 1]} : vector<2x128xf32> to vector<2x64xf32>
    %260 = arith.addf %258, %259 : vector<2x64xf32>
    %261 = arith.negf %260 : vector<2x64xf32>
    %262 = math.exp %261 : vector<2x64xf32>
    %cst_50 = arith.constant 1.000000e+00 : f32
    %263 = vector.broadcast %cst_50 : f32 to vector<2x64xf32>
    %264 = arith.addf %263, %262 : vector<2x64xf32>
    %265 = arith.divf %263, %264 : vector<2x64xf32>
    %266 = vector.extract_strided_slice %265 {offsets = [0, 0], sizes = [2, 32], strides = [1, 1]} : vector<2x64xf32> to vector<2x32xf32>
    %267 = vector.extract_strided_slice %265 {offsets = [0, 32], sizes = [2, 32], strides = [1, 1]} : vector<2x64xf32> to vector<2x32xf32>
    %268 = vector.extract_strided_slice %255 {offsets = [0, 64], sizes = [2, 32], strides = [1, 1]} : vector<2x128xf32> to vector<2x32xf32>
    %269 = vector.extract_strided_slice %257 {offsets = [0, 64], sizes = [2, 32], strides = [1, 1]} : vector<2x128xf32> to vector<2x32xf32>
    %270 = arith.mulf %266, %269 : vector<2x32xf32>
    %271 = arith.addf %268, %270 : vector<2x32xf32>
    %272 = math.tanh %271 : vector<2x32xf32>
    %cst_51 = arith.constant 1.000000e+00 : f32
    %273 = vector.broadcast %cst_51 : f32 to vector<2x32xf32>
    %274 = arith.subf %273, %267 : vector<2x32xf32>
    %275 = arith.mulf %274, %272 : vector<2x32xf32>
    %276 = arith.mulf %267, %228 : vector<2x32xf32>
    %277 = arith.addf %275, %276 : vector<2x32xf32>
    %c8 = arith.constant 8 : index
    %c0_52 = arith.constant 0 : index
    %278 = vector.load %arg3[%c8, %c0_52] : memref<16x32xf32, #tpu.memory_space<vmem>>, vector<2x32xf32>
    tpu.vector_store %arg3[%c8, %c0_52], %277 {strides = array<i32>} : memref<16x32xf32, #tpu.memory_space<vmem>>, vector<2x32xf32>,
    %cst_53 = arith.constant dense<0.000000e+00> : vector<2x128xf32>
    %279 = tpu.matmul %253, %1, %cst_53 {dimension_numbers = #tpu.dot_dimension_numbers<[1], [0], [0], [1], [0, 0, 1, 1], [], []>} : vector<2x32xf32>, vector<32x128xf32>, vector<2x128xf32> -> vector<2x128xf32>
    %280 = arith.addf %279, %19 : vector<2x128xf32>
    %281 = vector.extract_strided_slice %31 {offsets = [5, 0, 0], sizes = [1, 2, 128], strides = [1, 1, 1]} : vector<8x2x128xf32> to vector<1x2x128xf32>
    %282 = vector.shape_cast %281 : vector<1x2x128xf32> to vector<2x128xf32>
    %283 = vector.extract_strided_slice %282 {offsets = [0, 0], sizes = [2, 64], strides = [1, 1]} : vector<2x128xf32> to vector<2x64xf32>
    %284 = vector.extract_strided_slice %280 {offsets = [0, 0], sizes = [2, 64], strides = [1, 1]} : vector<2x128xf32> to vector<2x64xf32>
    %285 = arith.addf %283, %284 : vector<2x64xf32>
    %286 = arith.negf %285 : vector<2x64xf32>
    %287 = math.exp %286 : vector<2x64xf32>
    %cst_54 = arith.constant 1.000000e+00 : f32
    %288 = vector.broadcast %cst_54 : f32 to vector<2x64xf32>
    %289 = arith.addf %288, %287 : vector<2x64xf32>
    %290 = arith.divf %288, %289 : vector<2x64xf32>
    %291 = vector.extract_strided_slice %290 {offsets = [0, 0], sizes = [2, 32], strides = [1, 1]} : vector<2x64xf32> to vector<2x32xf32>
    %292 = vector.extract_strided_slice %290 {offsets = [0, 32], sizes = [2, 32], strides = [1, 1]} : vector<2x64xf32> to vector<2x32xf32>
    %293 = vector.extract_strided_slice %282 {offsets = [0, 64], sizes = [2, 32], strides = [1, 1]} : vector<2x128xf32> to vector<2x32xf32>
    %294 = vector.extract_strided_slice %280 {offsets = [0, 64], sizes = [2, 32], strides = [1, 1]} : vector<2x128xf32> to vector<2x32xf32>
    %295 = arith.mulf %291, %294 : vector<2x32xf32>
    %296 = arith.addf %293, %295 : vector<2x32xf32>
    %297 = math.tanh %296 : vector<2x32xf32>
    %cst_55 = arith.constant 1.000000e+00 : f32
    %298 = vector.broadcast %cst_55 : f32 to vector<2x32xf32>
    %299 = arith.subf %298, %292 : vector<2x32xf32>
    %300 = arith.mulf %299, %297 : vector<2x32xf32>
    %301 = arith.mulf %292, %253 : vector<2x32xf32>
    %302 = arith.addf %300, %301 : vector<2x32xf32>
    %cst_56 = arith.constant dense<0.000000e+00> : vector<2x128xf32>
    %303 = tpu.matmul %302, %2, %cst_56 {dimension_numbers = #tpu.dot_dimension_numbers<[1], [0], [0], [1], [0, 0, 1, 1], [], []>} : vector<2x32xf32>, vector<32x128xf32>, vector<2x128xf32> -> vector<2x128xf32>
    %304 = arith.addf %303, %21 : vector<2x128xf32>
    %cst_57 = arith.constant dense<0.000000e+00> : vector<2x128xf32>
    %305 = tpu.matmul %277, %3, %cst_57 {dimension_numbers = #tpu.dot_dimension_numbers<[1], [0], [0], [1], [0, 0, 1, 1], [], []>} : vector<2x32xf32>, vector<32x128xf32>, vector<2x128xf32> -> vector<2x128xf32>
    %306 = arith.addf %305, %23 : vector<2x128xf32>
    %307 = vector.extract_strided_slice %304 {offsets = [0, 0], sizes = [2, 64], strides = [1, 1]} : vector<2x128xf32> to vector<2x64xf32>
    %308 = vector.extract_strided_slice %306 {offsets = [0, 0], sizes = [2, 64], strides = [1, 1]} : vector<2x128xf32> to vector<2x64xf32>
    %309 = arith.addf %307, %308 : vector<2x64xf32>
    %310 = arith.negf %309 : vector<2x64xf32>
    %311 = math.exp %310 : vector<2x64xf32>
    %cst_58 = arith.constant 1.000000e+00 : f32
    %312 = vector.broadcast %cst_58 : f32 to vector<2x64xf32>
    %313 = arith.addf %312, %311 : vector<2x64xf32>
    %314 = arith.divf %312, %313 : vector<2x64xf32>
    %315 = vector.extract_strided_slice %314 {offsets = [0, 0], sizes = [2, 32], strides = [1, 1]} : vector<2x64xf32> to vector<2x32xf32>
    %316 = vector.extract_strided_slice %314 {offsets = [0, 32], sizes = [2, 32], strides = [1, 1]} : vector<2x64xf32> to vector<2x32xf32>
    %317 = vector.extract_strided_slice %304 {offsets = [0, 64], sizes = [2, 32], strides = [1, 1]} : vector<2x128xf32> to vector<2x32xf32>
    %318 = vector.extract_strided_slice %306 {offsets = [0, 64], sizes = [2, 32], strides = [1, 1]} : vector<2x128xf32> to vector<2x32xf32>
    %319 = arith.mulf %315, %318 : vector<2x32xf32>
    %320 = arith.addf %317, %319 : vector<2x32xf32>
    %321 = math.tanh %320 : vector<2x32xf32>
    %cst_59 = arith.constant 1.000000e+00 : f32
    %322 = vector.broadcast %cst_59 : f32 to vector<2x32xf32>
    %323 = arith.subf %322, %316 : vector<2x32xf32>
    %324 = arith.mulf %323, %321 : vector<2x32xf32>
    %325 = arith.mulf %316, %277 : vector<2x32xf32>
    %326 = arith.addf %324, %325 : vector<2x32xf32>
    %c10 = arith.constant 10 : index
    %c0_60 = arith.constant 0 : index
    %327 = vector.load %arg3[%c10, %c0_60] : memref<16x32xf32, #tpu.memory_space<vmem>>, vector<2x32xf32>
    tpu.vector_store %arg3[%c10, %c0_60], %326 {strides = array<i32>} : memref<16x32xf32, #tpu.memory_space<vmem>>, vector<2x32xf32>,
    %cst_61 = arith.constant dense<0.000000e+00> : vector<2x128xf32>
    %328 = tpu.matmul %302, %1, %cst_61 {dimension_numbers = #tpu.dot_dimension_numbers<[1], [0], [0], [1], [0, 0, 1, 1], [], []>} : vector<2x32xf32>, vector<32x128xf32>, vector<2x128xf32> -> vector<2x128xf32>
    %329 = arith.addf %328, %19 : vector<2x128xf32>
    %330 = vector.extract_strided_slice %31 {offsets = [6, 0, 0], sizes = [1, 2, 128], strides = [1, 1, 1]} : vector<8x2x128xf32> to vector<1x2x128xf32>
    %331 = vector.shape_cast %330 : vector<1x2x128xf32> to vector<2x128xf32>
    %332 = vector.extract_strided_slice %331 {offsets = [0, 0], sizes = [2, 64], strides = [1, 1]} : vector<2x128xf32> to vector<2x64xf32>
    %333 = vector.extract_strided_slice %329 {offsets = [0, 0], sizes = [2, 64], strides = [1, 1]} : vector<2x128xf32> to vector<2x64xf32>
    %334 = arith.addf %332, %333 : vector<2x64xf32>
    %335 = arith.negf %334 : vector<2x64xf32>
    %336 = math.exp %335 : vector<2x64xf32>
    %cst_62 = arith.constant 1.000000e+00 : f32
    %337 = vector.broadcast %cst_62 : f32 to vector<2x64xf32>
    %338 = arith.addf %337, %336 : vector<2x64xf32>
    %339 = arith.divf %337, %338 : vector<2x64xf32>
    %340 = vector.extract_strided_slice %339 {offsets = [0, 0], sizes = [2, 32], strides = [1, 1]} : vector<2x64xf32> to vector<2x32xf32>
    %341 = vector.extract_strided_slice %339 {offsets = [0, 32], sizes = [2, 32], strides = [1, 1]} : vector<2x64xf32> to vector<2x32xf32>
    %342 = vector.extract_strided_slice %331 {offsets = [0, 64], sizes = [2, 32], strides = [1, 1]} : vector<2x128xf32> to vector<2x32xf32>
    %343 = vector.extract_strided_slice %329 {offsets = [0, 64], sizes = [2, 32], strides = [1, 1]} : vector<2x128xf32> to vector<2x32xf32>
    %344 = arith.mulf %340, %343 : vector<2x32xf32>
    %345 = arith.addf %342, %344 : vector<2x32xf32>
    %346 = math.tanh %345 : vector<2x32xf32>
    %cst_63 = arith.constant 1.000000e+00 : f32
    %347 = vector.broadcast %cst_63 : f32 to vector<2x32xf32>
    %348 = arith.subf %347, %341 : vector<2x32xf32>
    %349 = arith.mulf %348, %346 : vector<2x32xf32>
    %350 = arith.mulf %341, %302 : vector<2x32xf32>
    %351 = arith.addf %349, %350 : vector<2x32xf32>
    %cst_64 = arith.constant dense<0.000000e+00> : vector<2x128xf32>
    %352 = tpu.matmul %351, %2, %cst_64 {dimension_numbers = #tpu.dot_dimension_numbers<[1], [0], [0], [1], [0, 0, 1, 1], [], []>} : vector<2x32xf32>, vector<32x128xf32>, vector<2x128xf32> -> vector<2x128xf32>
    %353 = arith.addf %352, %21 : vector<2x128xf32>
    %cst_65 = arith.constant dense<0.000000e+00> : vector<2x128xf32>
    %354 = tpu.matmul %326, %3, %cst_65 {dimension_numbers = #tpu.dot_dimension_numbers<[1], [0], [0], [1], [0, 0, 1, 1], [], []>} : vector<2x32xf32>, vector<32x128xf32>, vector<2x128xf32> -> vector<2x128xf32>
    %355 = arith.addf %354, %23 : vector<2x128xf32>
    %356 = vector.extract_strided_slice %353 {offsets = [0, 0], sizes = [2, 64], strides = [1, 1]} : vector<2x128xf32> to vector<2x64xf32>
    %357 = vector.extract_strided_slice %355 {offsets = [0, 0], sizes = [2, 64], strides = [1, 1]} : vector<2x128xf32> to vector<2x64xf32>
    %358 = arith.addf %356, %357 : vector<2x64xf32>
    %359 = arith.negf %358 : vector<2x64xf32>
    %360 = math.exp %359 : vector<2x64xf32>
    %cst_66 = arith.constant 1.000000e+00 : f32
    %361 = vector.broadcast %cst_66 : f32 to vector<2x64xf32>
    %362 = arith.addf %361, %360 : vector<2x64xf32>
    %363 = arith.divf %361, %362 : vector<2x64xf32>
    %364 = vector.extract_strided_slice %363 {offsets = [0, 0], sizes = [2, 32], strides = [1, 1]} : vector<2x64xf32> to vector<2x32xf32>
    %365 = vector.extract_strided_slice %363 {offsets = [0, 32], sizes = [2, 32], strides = [1, 1]} : vector<2x64xf32> to vector<2x32xf32>
    %366 = vector.extract_strided_slice %353 {offsets = [0, 64], sizes = [2, 32], strides = [1, 1]} : vector<2x128xf32> to vector<2x32xf32>
    %367 = vector.extract_strided_slice %355 {offsets = [0, 64], sizes = [2, 32], strides = [1, 1]} : vector<2x128xf32> to vector<2x32xf32>
    %368 = arith.mulf %364, %367 : vector<2x32xf32>
    %369 = arith.addf %366, %368 : vector<2x32xf32>
    %370 = math.tanh %369 : vector<2x32xf32>
    %cst_67 = arith.constant 1.000000e+00 : f32
    %371 = vector.broadcast %cst_67 : f32 to vector<2x32xf32>
    %372 = arith.subf %371, %365 : vector<2x32xf32>
    %373 = arith.mulf %372, %370 : vector<2x32xf32>
    %374 = arith.mulf %365, %326 : vector<2x32xf32>
    %375 = arith.addf %373, %374 : vector<2x32xf32>
    %c12 = arith.constant 12 : index
    %c0_68 = arith.constant 0 : index
    %376 = vector.load %arg3[%c12, %c0_68] : memref<16x32xf32, #tpu.memory_space<vmem>>, vector<2x32xf32>
    tpu.vector_store %arg3[%c12, %c0_68], %375 {strides = array<i32>} : memref<16x32xf32, #tpu.memory_space<vmem>>, vector<2x32xf32>,
    %cst_69 = arith.constant dense<0.000000e+00> : vector<2x128xf32>
    %377 = tpu.matmul %351, %1, %cst_69 {dimension_numbers = #tpu.dot_dimension_numbers<[1], [0], [0], [1], [0, 0, 1, 1], [], []>} : vector<2x32xf32>, vector<32x128xf32>, vector<2x128xf32> -> vector<2x128xf32>
    %378 = arith.addf %377, %19 : vector<2x128xf32>
    %379 = vector.extract_strided_slice %31 {offsets = [7, 0, 0], sizes = [1, 2, 128], strides = [1, 1, 1]} : vector<8x2x128xf32> to vector<1x2x128xf32>
    %380 = vector.shape_cast %379 : vector<1x2x128xf32> to vector<2x128xf32>
    %381 = vector.extract_strided_slice %380 {offsets = [0, 0], sizes = [2, 64], strides = [1, 1]} : vector<2x128xf32> to vector<2x64xf32>
    %382 = vector.extract_strided_slice %378 {offsets = [0, 0], sizes = [2, 64], strides = [1, 1]} : vector<2x128xf32> to vector<2x64xf32>
    %383 = arith.addf %381, %382 : vector<2x64xf32>
    %384 = arith.negf %383 : vector<2x64xf32>
    %385 = math.exp %384 : vector<2x64xf32>
    %cst_70 = arith.constant 1.000000e+00 : f32
    %386 = vector.broadcast %cst_70 : f32 to vector<2x64xf32>
    %387 = arith.addf %386, %385 : vector<2x64xf32>
    %388 = arith.divf %386, %387 : vector<2x64xf32>
    %389 = vector.extract_strided_slice %388 {offsets = [0, 0], sizes = [2, 32], strides = [1, 1]} : vector<2x64xf32> to vector<2x32xf32>
    %390 = vector.extract_strided_slice %388 {offsets = [0, 32], sizes = [2, 32], strides = [1, 1]} : vector<2x64xf32> to vector<2x32xf32>
    %391 = vector.extract_strided_slice %380 {offsets = [0, 64], sizes = [2, 32], strides = [1, 1]} : vector<2x128xf32> to vector<2x32xf32>
    %392 = vector.extract_strided_slice %378 {offsets = [0, 64], sizes = [2, 32], strides = [1, 1]} : vector<2x128xf32> to vector<2x32xf32>
    %393 = arith.mulf %389, %392 : vector<2x32xf32>
    %394 = arith.addf %391, %393 : vector<2x32xf32>
    %395 = math.tanh %394 : vector<2x32xf32>
    %cst_71 = arith.constant 1.000000e+00 : f32
    %396 = vector.broadcast %cst_71 : f32 to vector<2x32xf32>
    %397 = arith.subf %396, %390 : vector<2x32xf32>
    %398 = arith.mulf %397, %395 : vector<2x32xf32>
    %399 = arith.mulf %390, %351 : vector<2x32xf32>
    %400 = arith.addf %398, %399 : vector<2x32xf32>
    %cst_72 = arith.constant dense<0.000000e+00> : vector<2x128xf32>
    %401 = tpu.matmul %400, %2, %cst_72 {dimension_numbers = #tpu.dot_dimension_numbers<[1], [0], [0], [1], [0, 0, 1, 1], [], []>} : vector<2x32xf32>, vector<32x128xf32>, vector<2x128xf32> -> vector<2x128xf32>
    %402 = arith.addf %401, %21 : vector<2x128xf32>
    %cst_73 = arith.constant dense<0.000000e+00> : vector<2x128xf32>
    %403 = tpu.matmul %375, %3, %cst_73 {dimension_numbers = #tpu.dot_dimension_numbers<[1], [0], [0], [1], [0, 0, 1, 1], [], []>} : vector<2x32xf32>, vector<32x128xf32>, vector<2x128xf32> -> vector<2x128xf32>
    %404 = arith.addf %403, %23 : vector<2x128xf32>
    %405 = vector.extract_strided_slice %402 {offsets = [0, 0], sizes = [2, 64], strides = [1, 1]} : vector<2x128xf32> to vector<2x64xf32>
    %406 = vector.extract_strided_slice %404 {offsets = [0, 0], sizes = [2, 64], strides = [1, 1]} : vector<2x128xf32> to vector<2x64xf32>
    %407 = arith.addf %405, %406 : vector<2x64xf32>
    %408 = arith.negf %407 : vector<2x64xf32>
    %409 = math.exp %408 : vector<2x64xf32>
    %cst_74 = arith.constant 1.000000e+00 : f32
    %410 = vector.broadcast %cst_74 : f32 to vector<2x64xf32>
    %411 = arith.addf %410, %409 : vector<2x64xf32>
    %412 = arith.divf %410, %411 : vector<2x64xf32>
    %413 = vector.extract_strided_slice %412 {offsets = [0, 0], sizes = [2, 32], strides = [1, 1]} : vector<2x64xf32> to vector<2x32xf32>
    %414 = vector.extract_strided_slice %412 {offsets = [0, 32], sizes = [2, 32], strides = [1, 1]} : vector<2x64xf32> to vector<2x32xf32>
    %415 = vector.extract_strided_slice %402 {offsets = [0, 64], sizes = [2, 32], strides = [1, 1]} : vector<2x128xf32> to vector<2x32xf32>
    %416 = vector.extract_strided_slice %404 {offsets = [0, 64], sizes = [2, 32], strides = [1, 1]} : vector<2x128xf32> to vector<2x32xf32>
    %417 = arith.mulf %413, %416 : vector<2x32xf32>
    %418 = arith.addf %415, %417 : vector<2x32xf32>
    %419 = math.tanh %418 : vector<2x32xf32>
    %cst_75 = arith.constant 1.000000e+00 : f32
    %420 = vector.broadcast %cst_75 : f32 to vector<2x32xf32>
    %421 = arith.subf %420, %414 : vector<2x32xf32>
    %422 = arith.mulf %421, %419 : vector<2x32xf32>
    %423 = arith.mulf %414, %375 : vector<2x32xf32>
    %424 = arith.addf %422, %423 : vector<2x32xf32>
    %c14 = arith.constant 14 : index
    %c0_76 = arith.constant 0 : index
    %425 = vector.load %arg3[%c14, %c0_76] : memref<16x32xf32, #tpu.memory_space<vmem>>, vector<2x32xf32>
    tpu.vector_store %arg3[%c14, %c0_76], %424 {strides = array<i32>} : memref<16x32xf32, #tpu.memory_space<vmem>>, vector<2x32xf32>,
    %c0_77 = arith.constant 0 : index
    %c0_78 = arith.constant 0 : index
    %426 = vector.load %arg3[%c0_77, %c0_78] : memref<16x32xf32, #tpu.memory_space<vmem>>, vector<16x32xf32>
    %cst_79 = arith.constant dense<0.000000e+00> : vector<16x128xf32>
    %427 = tpu.matmul %426, %4, %cst_79 {dimension_numbers = #tpu.dot_dimension_numbers<[1], [0], [0], [1], [0, 0, 1, 1], [], []>} : vector<16x32xf32>, vector<32x128xf32>, vector<16x128xf32> -> vector<16x128xf32>
    %428 = vector.broadcast %12 : vector<1x128xf32> to vector<16x128xf32>
    %429 = arith.addf %427, %428 : vector<16x128xf32>
    %430 = vector.shape_cast %429 : vector<16x128xf32> to vector<8x2x128xf32>
    %431 = vector.extract_strided_slice %430 {offsets = [7, 0, 0], sizes = [1, 2, 128], strides = [1, 1, 1]} : vector<8x2x128xf32> to vector<1x2x128xf32>
    %432 = vector.shape_cast %431 : vector<1x2x128xf32> to vector<2x128xf32>
    %433 = vector.extract_strided_slice %432 {offsets = [0, 0], sizes = [2, 32], strides = [1, 1]} : vector<2x128xf32> to vector<2x32xf32>
    %434 = vector.extract_strided_slice %430 {offsets = [0, 0, 32], sizes = [8, 2, 32], strides = [1, 1, 1]} : vector<8x2x128xf32> to vector<8x2x32xf32>
    %435 = vector.extract_strided_slice %430 {offsets = [0, 0, 64], sizes = [8, 2, 32], strides = [1, 1, 1]} : vector<8x2x128xf32> to vector<8x2x32xf32>
    %436 = tpu.iota {dimensions = array<i32: 1>} : vector<1x32xi32>
    %c16_i32 = arith.constant 16 : i32
    %437 = vector.broadcast %c16_i32 : i32 to vector<1x32xi32>
    %438 = arith.cmpi slt, %436, %437 : vector<1x32xi32>
    %439 = arith.extui %438 : vector<1x32xi1> to vector<1x32xi32>
    %440 = arith.sitofp %439 : vector<1x32xi32> to vector<1x32xf32>
    %cst_80 = arith.constant 1.000000e+00 : f32
    %441 = vector.broadcast %cst_80 : f32 to vector<1x32xf32>
    %442 = arith.subf %441, %440 : vector<1x32xf32>
    %443 = vector.shape_cast %433 : vector<2x32xf32> to vector<1x2x32xf32>
    %444 = vector.broadcast %443 : vector<1x2x32xf32> to vector<8x2x32xf32>
    %445 = arith.mulf %444, %434 : vector<8x2x32xf32>
    %446 = vector.shape_cast %440 : vector<1x32xf32> to vector<1x1x32xf32>
    %447 = vector.broadcast %446 : vector<1x1x32xf32> to vector<8x2x32xf32>
    %448 = arith.mulf %445, %447 : vector<8x2x32xf32>
    %cst_81 = arith.constant dense<0.000000e+00> : vector<8x2xf32>
    %449 = vector.multi_reduction <add>, %448, %cst_81 [2] : vector<8x2x32xf32> to vector<8x2xf32>
    %450 = vector.shape_cast %449 : vector<8x2xf32> to vector<8x2x1xf32>
    %cst_82 = arith.constant 2.500000e-01 : f32
    %451 = vector.broadcast %cst_82 : f32 to vector<8x2x1xf32>
    %452 = arith.mulf %450, %451 : vector<8x2x1xf32>
    %453 = vector.shape_cast %442 : vector<1x32xf32> to vector<1x1x32xf32>
    %454 = vector.broadcast %453 : vector<1x1x32xf32> to vector<8x2x32xf32>
    %455 = arith.mulf %445, %454 : vector<8x2x32xf32>
    %cst_83 = arith.constant dense<0.000000e+00> : vector<8x2xf32>
    %456 = vector.multi_reduction <add>, %455, %cst_83 [2] : vector<8x2x32xf32> to vector<8x2xf32>
    %457 = vector.shape_cast %456 : vector<8x2xf32> to vector<8x2x1xf32>
    %cst_84 = arith.constant 2.500000e-01 : f32
    %458 = vector.broadcast %cst_84 : f32 to vector<8x2x1xf32>
    %459 = arith.mulf %457, %458 : vector<8x2x1xf32>
    %cst_85 = arith.constant dense<0xFF800000> : vector<2x1xf32>
    %460 = vector.multi_reduction <maximumf>, %452, %cst_85 [0] : vector<8x2x1xf32> to vector<2x1xf32>
    %461 = vector.shape_cast %460 : vector<2x1xf32> to vector<1x2x1xf32>
    %462 = vector.broadcast %461 : vector<1x2x1xf32> to vector<8x2x1xf32>
    %463 = arith.subf %452, %462 : vector<8x2x1xf32>
    %464 = math.exp %463 : vector<8x2x1xf32>
    %cst_86 = arith.constant dense<0.000000e+00> : vector<2x1xf32>
    %465 = vector.multi_reduction <add>, %464, %cst_86 [0] : vector<8x2x1xf32> to vector<2x1xf32>
    %466 = vector.shape_cast %465 : vector<2x1xf32> to vector<1x2x1xf32>
    %467 = vector.broadcast %466 : vector<1x2x1xf32> to vector<8x2x1xf32>
    %468 = arith.divf %464, %467 : vector<8x2x1xf32>
    %cst_87 = arith.constant dense<0xFF800000> : vector<2x1xf32>
    %469 = vector.multi_reduction <maximumf>, %459, %cst_87 [0] : vector<8x2x1xf32> to vector<2x1xf32>
    %470 = vector.shape_cast %469 : vector<2x1xf32> to vector<1x2x1xf32>
    %471 = vector.broadcast %470 : vector<1x2x1xf32> to vector<8x2x1xf32>
    %472 = arith.subf %459, %471 : vector<8x2x1xf32>
    %473 = math.exp %472 : vector<8x2x1xf32>
    %cst_88 = arith.constant dense<0.000000e+00> : vector<2x1xf32>
    %474 = vector.multi_reduction <add>, %473, %cst_88 [0] : vector<8x2x1xf32> to vector<2x1xf32>
    %475 = vector.shape_cast %474 : vector<2x1xf32> to vector<1x2x1xf32>
    %476 = vector.broadcast %475 : vector<1x2x1xf32> to vector<8x2x1xf32>
    %477 = arith.divf %473, %476 : vector<8x2x1xf32>
    %478 = vector.shape_cast %440 : vector<1x32xf32> to vector<1x1x32xf32>
    %479 = vector.broadcast %468 : vector<8x2x1xf32> to vector<8x2x32xf32>
    %480 = vector.broadcast %478 : vector<1x1x32xf32> to vector<8x2x32xf32>
    %481 = arith.mulf %479, %480 : vector<8x2x32xf32>
    %482 = vector.shape_cast %442 : vector<1x32xf32> to vector<1x1x32xf32>
    %483 = vector.broadcast %477 : vector<8x2x1xf32> to vector<8x2x32xf32>
    %484 = vector.broadcast %482 : vector<1x1x32xf32> to vector<8x2x32xf32>
    %485 = arith.mulf %483, %484 : vector<8x2x32xf32>
    %486 = arith.addf %481, %485 : vector<8x2x32xf32>
    %487 = arith.mulf %486, %435 : vector<8x2x32xf32>
    %cst_89 = arith.constant dense<0.000000e+00> : vector<2x32xf32>
    %488 = vector.multi_reduction <add>, %487, %cst_89 [0] : vector<8x2x32xf32> to vector<2x32xf32>
    %cst_90 = arith.constant dense<0.000000e+00> : vector<2x128xf32>
    %489 = tpu.matmul %488, %4, %cst_90 {dimension_numbers = #tpu.dot_dimension_numbers<[1], [0], [0], [1], [0, 0, 1, 1], [], []>} : vector<2x32xf32>, vector<32x128xf32>, vector<2x128xf32> -> vector<2x128xf32>
    %490 = vector.extract_strided_slice %489 {offsets = [0, 96], sizes = [2, 32], strides = [1, 1]} : vector<2x128xf32> to vector<2x32xf32>
    %491 = vector.broadcast %14 : vector<1x32xf32> to vector<2x32xf32>
    %492 = arith.addf %490, %491 : vector<2x32xf32>
    %493 = vector.broadcast %15 : vector<1x32xf32> to vector<2x32xf32>
    %494 = arith.mulf %424, %493 : vector<2x32xf32>
    %495 = vector.broadcast %16 : vector<1x32xf32> to vector<2x32xf32>
    %496 = arith.mulf %492, %495 : vector<2x32xf32>
    %497 = arith.addf %494, %496 : vector<2x32xf32>
    %cst_91 = arith.constant dense<0.000000e+00> : vector<2xf32>
    %498 = vector.multi_reduction <add>, %497, %cst_91 [1] : vector<2x32xf32> to vector<2xf32>
    %499 = vector.shape_cast %498 : vector<2xf32> to vector<2x1xf32>
    %500 = vector.broadcast %17 : vector<1x1xf32> to vector<2x1xf32>
    %501 = arith.addf %499, %500 : vector<2x1xf32>
    %c0_92 = arith.constant 0 : index
    %c0_93 = arith.constant 0 : index
    %502 = vector.load %arg2[%c0_92, %c0_93] : memref<2x1xf32, #tpu.memory_space<vmem>>, vector<2x1xf32>
    tpu.vector_store %arg2[%c0_92, %c0_93], %501 {strides = array<i32>} : memref<2x1xf32, #tpu.memory_space<vmem>>, vector<2x1xf32>,
    return
  }
}

</mosaic_0001>

<bundles_post_ra>
// kernel: alstm2_apply.1
= control target key start
LH: loop header
LB: loop body
LE: loop exit
PB: predicated region body
PF: predicated region fallthrough
CT: control target
= control target key end

     0   :  { %7 = vsyncpa [#allocation4], 0  ;;  %s4006_s9 = smov [#allocation3]   ;;  %s4703_s0 = inlined_call_operand.vmem [shape: f32[16,8], index: 0, kind: input, shape index: {}]   ;;  %s4704_s1 = inlined_call_operand.hbm [shape: f32[176,128], index: 1, kind: input, shape index: {}]   ;;  %s4705_s2 = inlined_call_operand.vmem [shape: f32[2,1], index: 2, kind: output, shape index: {}]  }
   0x1   :  { %s15_s10 = sshll.u32 %s4006_s9, 4  ;;  %s3982_s13 = scalar_lea.hbm %s4704_s1, 2816  ;;  %s16_s10 = int_to_ptr.vmem [resolvable:$true] %s15_s10 }
   0x2   :  { %p3983_p0 = scmp.ne.s32.totalorder %s4704_s1, %s3982_s13  ;;  %p3986_p1 = scmp.lt.u32.totalorder %s3982_s13, %s4704_s1 }
   0x4   :  { %p3988_p2 = pnand %p3986_p1, %p3983_p0 }
   0x6   :  { %3991 = shalt.err (!%p3988_p2)
}
   0x7   :  { %s3992_s18 = scalar_lea.vmem %s16_s10, 2816  ;;  %p3997_p4 = scmp.lt.s32.totalorder %s16_s10, %s16_s10 }
   0x8   :  { %p3993_p3 = scmp.ne.s32.totalorder %s16_s10, %s3992_s18  ;;  %p3998_p5 = scmp.lt.s32.totalorder %s3992_s18, %s3992_s18 }
   0xa   :  { %p3999_p6 = por %p3998_p5, %p3997_p4 }
   0xc   :  { %p4000_p7 = pnand %p3999_p6, %p3993_p3 }
   0xe   :  { %4003 = shalt.err (!%p4000_p7)
}
   0xf   :  { %s4007_s19 = smov 128   ;;  %s4008_s20 = smov 8  }
  0x10   :  { %21 = dma.hbm_to_vmem [thread:$0]  %s4704_s1, 2816, %s16_s10, [#allocation4], %s4007_s19, %s4007_s19, %s4008_s20  }
  0x11   :  { %4004 = dma.done.wait [#allocation4], 2816  }
  0x12   :  { %4005 = vsyncadd [#allocation4], 4294964480  ;;  %vm65_vm0 = vcmask 64512   ;;  %v45_v0 = vld [vmem:[#allocation3 + $0xa0] sm:$0xff]  ;;  %v59_v1 = vld [vmem:[%s4703_s0] sm:$0xff]  ;;  %v4009_v10 = vmov 0.0|0.0   ;;  %v47_v17 = vlaneseq }
  0x13   :  { %v60_v2 = vld [vmem:[%s4703_s0 + $0x8] sm:$0xff]  ;;  %3372 = vmatprep.subr.mxu0 %v45_v0  ;;  %3374 = vmatprep.mubr.msk.f32.mxu0 %vm65_vm0, %v59_v1  ;;  %v29_v3 = vld [vmem:[#allocation3 + $0x20] sm:$0xff]  ;;  %v30_v4 = vld [vmem:[#allocation3 + $0x28] sm:$0xff]  ;;  %vm4010_vm1 = vmmov 0   ;;  %v4011_v13 = vmov 0.0   ;;  %vm151_vm2 = vcmask 261120  }
  0x14   :  { %v31_v5 = vld [vmem:[#allocation3 + $0x30] sm:$0xff]  ;;  %3373 = vmatpush3.msra.mxu0 %v45_v0  ;;  %v4048_v6 = vpack.c.bf16 %v30_v4, %v29_v3  ;;  %v32_v7 = vld [vmem:[#allocation3 + $0x38] sm:$0xff]  ;;  %v25_v8 = vld [vmem:[#allocation3] sm:$0xff]  ;;  %v4064_v18 = vshrl.u32 %v47_v17, 7  ;;  %v4012_v22 = vmov 1983009808  }
  0x15   :  { %v26_v9 = vld [vmem:[#allocation3 + $0x8] sm:$0xff]  ;;  %3375 = vmatmul.mubr.msk.f32.vlgmr.msra.gmra.mrb[0].mxu0 %vm65_vm0, %v60_v2  ;;  %3682 = vmatprep.subr.bf16.mxu0 %v4009_v10  ;;  %v4052_v12 = vpack.c.bf16 %v32_v7, %v31_v5  ;;  %v27_v14 = vld [vmem:[#allocation3 + $0x10] sm:$0xff]  ;;  %v28_v15 = vld [vmem:[#allocation3 + $0x18] sm:$0xff]  ;;  %v237_v23 = vunpack.c.l.s4 %v4012_v22  ;;  %s4013_s0 = smov 64   ;;  %s4014_s1 = smov 96   ;;  %vm565_vm3 = vcmask 254976  }
  0x16   :  { %v3674_v11 = vpack.c.bf16 %v26_v9, %v25_v8  ;;  %3684 = vmatpush3.bf16.msra.mxu0 %v4048_v6  ;;  %3396 = vmatprep.mubr.msk.f32.mxu0 %vm4010_vm1, %v4011_v13  ;;  %v3678_v16 = vpack.c.bf16 %v28_v15, %v27_v14  ;;  %v63_v19 = vsub.s32 5, %v4064_v18  ;;  %v4067_v20 = vld [vmem:[#allocation3 + $0xa8] sm:$0xff]  ;;  %v49_v26 = vsub.s32 1, %v4064_v18  ;;  %v37_v52 = vld [vmem:[#allocation3 + $0x60] sm:$0xff]  ;;  %v39_v54 = vld [vmem:[#allocation3 + $0x70] sm:$0xff] }
  0x17   :  { %3685 = vmatprep.subr.bf16.mxu0 %v4009_v10  ;;  %v238_v29 = vunpack.c.0.s8 %v237_v23  ;;  %v149_v36 = vsub.s32 0, %v4064_v18  ;;  %v38_v53 = vld [vmem:[#allocation3 + $0x68] sm:$0xff]  ;;  %v40_v56 = vld [vmem:[#allocation3 + $0x78] sm:$0xff]  ;;  %v33_v57 = vld [vmem:[#allocation3 + $0x40] sm:$0xff]  ;;  %v57_v8 = vsub.s32 3, %v4064_v18  ;;  %vm2825_vm5 = vcmask 1041408  }
  0x18   :  { %3675 = vmatprep.subr.bf16.mxu1 %v3674_v11  ;;  %v4070_v21 = vrot.slane %v4067_v20, %v63_v19  ;;  %v4078_v30 = vrot.slane %v4067_v20, %v49_v26  ;;  %v4101_v55 = vpack.c.bf16 %v38_v53, %v37_v52  ;;  %v34_v58 = vld [vmem:[#allocation3 + $0x48] sm:$0xff]  ;;  %v35_v60 = vld [vmem:[#allocation3 + $0x50] sm:$0xff]  ;;  %v36_v61 = vld [vmem:[#allocation3 + $0x58] sm:$0xff]  ;;  %v4106_v62 = vpack.c.bf16 %v40_v56, %v39_v54 }
  0x19   :  { %3677 = vmatpush3.bf16.msra.mxu1 %v3674_v11  ;;  %v4083_v31 = vsub.s32 %v238_v29, %v4064_v18  ;;  %v150_v37 = vrot.slane %v4067_v20, %v149_v36  ;;  %v4103_v59 = vpack.c.bf16 %v34_v58, %v33_v57  ;;  %v4110_v63 = vpack.c.bf16 %v36_v61, %v35_v60 }
  0x1a   :  { %3687 = vmatpush3.bf16.msra.mxu0 %v4052_v12  ;;  %3679 = vmatprep.subr.bf16.mxu1 %v3678_v16  ;;  %v4132_v9 = vrot.slane %v4067_v20, %v57_v8  ;;  %v53_v19 = vsub.s32 2, %v4064_v18  ;;  %vm3179_vm6 = vcmask 1024  }
  0x1b   :  { %3694 = vmatprep.subr.bf16.mxu0 %v4009_v10 }
  0x1c   :  { %v4152_v22 = vrot.slane %v4067_v20, %v53_v19 }
  0x1d   :  { %3397 = vmatmul.mubr.f32.vlgmr.msra.gmra.mrb[2].mxu0 %v4011_v13  ;;  %3681 = vmatpush3.bf16.msra.mxu1 %v3678_v16 }
  0x1e   :  { %3418 = vmatprep.mubr.msk.f32.mxu0 %vm4010_vm1, %v4011_v13  ;;  %3688 = vmatprep.subr.bf16.mxu1 %v4009_v10 }
  0x1f   :  { %3696 = vmatpush3.bf16.msra.mxu0 %v4101_v55 }
  0x20   :  { %3697 = vmatprep.subr.bf16.mxu0 %v4009_v10 }
  0x23   :  { %3699 = vmatpush3.bf16.msra.mxu0 %v4106_v62 }
  0x24   :  { %3706 = vmatprep.subr.bf16.mxu0 %v4009_v10 }
  0x26   :  { %3419 = vmatmul.mubr.f32.vlgmr.msra.gmra.mrb[4].mxu0 %v4011_v13 }
  0x27   :  { %3708 = vmatpush3.bf16.msra.mxu0 %v4103_v59  ;;  %3440 = vmatprep.mubr.msk.f32.mxu0 %vm4010_vm1, %v4011_v13 }
  0x28   :  { %3709 = vmatprep.subr.bf16.mxu0 %v4009_v10 }
  0x2b   :  { %3711 = vmatpush3.bf16.msra.mxu0 %v4110_v63 }
  0x2c   :  { %3718 = vmatprep.subr.bf16.mxu0 %v4009_v10 }
  0xe8   :  { %v3376_v24 = vpop.f32.mrb[0].mxu0 }
  0xe9   :  { %v138_v25 = vpop.f32.mrb[1].mxu0  ;;  %v144_v28 = vadd.f32 %v3376_v24, %v4070_v21 }
  0xea   :  { %v139_v27 = vadd.f32 %v138_v25, %v4070_v21 }
  0xec   :  { %3385 = vmatprep.mubr.msk.f32.mxu1 %vm151_vm2, %v139_v27 }
  0xed   :  { %3386 = vmatmul.mubr.msk.f32.vlgmr.msra.gmra.mrb[0].mxu1 %vm151_vm2, %v144_v28 }
  0xee   :  { %3407 = vmatprep.mubr.msk.f32.mxu1 %vm4010_vm1, %v4011_v13  ;;  %3690 = vmatpush3.bf16.msra.mxu1 %v4103_v59 }
  0xef   :  { %3691 = vmatprep.subr.bf16.mxu1 %v4009_v10 }
  0xf0   :  { %v346_v32 = vpop.f32.mrb[2].mxu0 }
  0xf1   :  { %v347_v33 = vadd.f32 %v346_v32, %v4078_v30  ;;  %v3398_v34 = vpop.f32.mrb[3].mxu0 }
  0xf2   :  { %3693 = vmatpush3.bf16.msra.mxu1 %v4110_v63 }
  0xf3   :  { %v364_v35 = vrot.slane %v347_v33, %v4083_v31  ;;  %3700 = vmatprep.subr.bf16.mxu1 %v4009_v10 }
  0xf5   :  { %365 = vrot.lane.b32.xlu0 %v364_v35, %s4013_s0 }
  0xf9   :  { %v531_v11 = vpop.f32.mrb[4].mxu0 }
  0xfa   :  { %v532_v14 = vadd.f32 %v531_v11, %v4132_v9  ;;  %v3420_v15 = vpop.f32.mrb[5].mxu0 }
 0x167   :  { %v366_v47 = vpop.permute.xlu0 %365 }
 0x1c0   :  { %v3387_v38 = vpop.f32.mrb[0].mxu1 }
 0x1c1   :  { %v4090_v39 = vadd.f32 %v3387_v38, %v150_v37  ;;  %v224_v40 = vpop.f32.mrb[1].mxu1 }
 0x1c2   :  { %v4092_v41 = vadd.f32 %v224_v40, %v150_v37 }
 0x1c4   :  { %v4096_v42 = vrot.slane %v4092_v41, %v4083_v31 }
 0x1c6   :  { %v350_v43 = vadd.f32 %v347_v33, %v4096_v42  ;;  %v250_v38 = vcombine.high %v4096_v42, %v4096_v42 }
 0x1c8   :  { %v3190_v44 = vmul.f32 -1.442695, %v350_v43 }
 0x1ca   :  { %3849 = vpow2.f32 %v3190_v44 }
 0x1d4   :  { %v3850_v45 = vpop.eup %3849 }
 0x1d5   :  { %v354_v46 = vadd.f32 1.0, %v3850_v45 }
 0x1d7   :  { %3851 = vrcp.f32 %v354_v46 }
 0x1e1   :  { %v3852_v48 = vpop.eup %3851 }
 0x1e2   :  { %v368_v49 = vmul.f32 %v3852_v48, %v366_v47  ;;  %v375_v1 = vsub.f32 1.0, %v3852_v48  ;;  %v381_v3 = vmul.f32 0.0, %v3852_v48 }
 0x1e4   :  { %370 = vrot.lane.b32.xlu0 %v368_v49, %s4013_s0 }
 0x256   :  { %v371_v50 = vpop.permute.xlu0 %370 }
 0x257   :  { %v373_v51 = vadd.f32 %v371_v50, %v4096_v42 }
 0x259   :  { %3853 = vtanh.f32 %v373_v51 }
 0x263   :  { %v3854_v0 = vpop.eup %3853 }
 0x264   :  { %377 = vrot.lane.b32.xlu1 %v3854_v0, %s4014_s1 }
 0x2d6   :  { %v378_v2 = vpop.permute.xlu1 %377 }
 0x2d7   :  { %v380_v4 = vmul.f32 %v378_v2, %v375_v1 }
 0x2d9   :  { %v4125_v5 = vadd.f32 %v381_v3, %v380_v4 }
 0x2db   :  { %v390_v7 = vrot.slane %v4125_v5, %v4083_v31 }
 0x2dd   :  { %391 = vrot.lane.b32.xlu1 %v390_v7, %s4014_s1 }
 0x2e1   :  { %543 = vrot.lane.b32.xlu1 %v532_v14, %s4013_s0 }
 0x34f   :  { %v392_v16 = vpop.permute.xlu1 %391 }
 0x350   :  { %3408 = vmatmul.mubr.msk.f32.vlgmr.msra.gmra.mrb[2].mxu1 %vm151_vm2, %v392_v16 }
 0x351   :  { %3702 = vmatpush3.bf16.msra.mxu1 %v4048_v6  ;;  %3429 = vmatprep.mubr.msk.f32.mxu1 %vm4010_vm1, %v4011_v13 }
 0x352   :  { %3703 = vmatprep.subr.bf16.mxu1 %v4009_v10 }
 0x353   :  { %v544_v20 = vpop.permute.xlu1 %543 }
 0x355   :  { %3705 = vmatpush3.bf16.msra.mxu1 %v4052_v12 }
 0x356   :  { %3712 = vmatprep.subr.bf16.mxu1 %v4009_v10 }
 0x358   :  { %3430 = vmatmul.mubr.msk.f32.vlgmr.msra.gmra.mrb[4].mxu1 %vm151_vm2, %v392_v16 }
 0x359   :  { %3714 = vmatpush3.bf16.msra.mxu1 %v4101_v55  ;;  %3451 = vmatprep.mubr.msk.f32.mxu1 %vm4010_vm1, %v4011_v13 }
 0x35a   :  { %3715 = vmatprep.subr.bf16.mxu1 %v4009_v10 }
 0x35d   :  { %3717 = vmatpush3.bf16.msra.mxu1 %v4106_v62 }
 0x35e   :  { %3724 = vmatprep.subr.bf16.mxu1 %v4009_v10 }
 0x423   :  { %v461_v23 = vpop.f32.mrb[2].mxu1 }
 0x424   :  { %v462_v24 = vadd.f32 %v461_v23, %v4152_v22  ;;  %v3409_v25 = vpop.f32.mrb[3].mxu1 }
 0x426   :  { %v535_v26 = vadd.f32 %v532_v14, %v462_v24 }
 0x428   :  { %v3192_v27 = vmul.f32 -1.442695, %v535_v26 }
 0x42a   :  { %3855 = vpow2.f32 %v3192_v27 }
 0x42b   :  { %v633_v28 = vpop.f32.mrb[4].mxu1 }
 0x42c   :  { %v634_v29 = vadd.f32 %v633_v28, %v4078_v30  ;;  %v3431_v32 = vpop.f32.mrb[5].mxu1 }
 0x42e   :  { %v651_v33 = vrot.slane %v634_v29, %v4083_v31  ;;  %v637_v40 = vadd.f32 %v634_v29, %v250_v38 }
 0x430   :  { %652 = vrot.lane.b32.xlu0 %v651_v33, %s4013_s0  ;;  %v3194_v43 = vmul.f32 -1.442695, %v637_v40 }
 0x434   :  { %v3856_v34 = vpop.eup %3855 }
 0x435   :  { %v539_v35 = vadd.f32 1.0, %v3856_v34 }
 0x437   :  { %3857 = vrcp.f32 %v539_v35 }
 0x438   :  { %3859 = vpow2.f32 %v3194_v43 }
 0x441   :  { %v3858_v36 = vpop.eup %3857 }
 0x442   :  { %v546_v37 = vmul.f32 %v3858_v36, %v544_v20  ;;  %v3860_v44 = vpop.eup %3859  ;;  %v553_v54 = vsub.f32 1.0, %v3858_v36  ;;  %v559_v57 = vmul.f32 0.0, %v3858_v36  ;;  %v235_v20 = vcombine.high %v4092_v41, %v4092_v41 }
 0x443   :  { %v641_v45 = vadd.f32 1.0, %v3860_v44 }
 0x444   :  { %548 = vrot.lane.b32.xlu1 %v546_v37, %s4013_s0  ;;  %v4206_v36 = vrot.slane %v235_v20, %v4083_v31 }
 0x445   :  { %3861 = vrcp.f32 %v641_v45 }
 0x44f   :  { %v3862_v46 = vpop.eup %3861 }
 0x450   :  { %v662_v61 = vsub.f32 1.0, %v3862_v46  ;;  %v668_v1 = vmul.f32 %v3862_v46, %v4125_v5 }
 0x4a2   :  { %v653_v47 = vpop.permute.xlu0 %652 }
 0x4a3   :  { %v655_v48 = vmul.f32 %v3862_v46, %v653_v47 }
 0x4a5   :  { %657 = vrot.lane.b32.xlu0 %v655_v48, %s4013_s0 }
 0x4b6   :  { %v549_v49 = vpop.permute.xlu1 %548 }
 0x4b7   :  { %v551_v50 = vadd.f32 %v549_v49, %v462_v24 }
 0x4b9   :  { %3863 = vtanh.f32 %v551_v50 }
 0x4c3   :  { %v3864_v51 = vpop.eup %3863 }
 0x4c4   :  { %555 = vrot.lane.b32.xlu1 %v3864_v51, %s4014_s1 }
 0x517   :  { %v658_v52 = vpop.permute.xlu0 %657 }
 0x518   :  { %v660_v53 = vadd.f32 %v658_v52, %v250_v38 }
 0x51a   :  { %3865 = vtanh.f32 %v660_v53 }
 0x524   :  { %v3866_v42 = vpop.eup %3865 }
 0x525   :  { %664 = vrot.lane.b32.xlu0 %v3866_v42, %s4014_s1 }
 0x536   :  { %v556_v56 = vpop.permute.xlu1 %555 }
 0x537   :  { %v558_v58 = vmul.f32 %v556_v56, %v553_v54 }
 0x539   :  { %v4164_v60 = vadd.f32 %v559_v57, %v558_v58 }
 0x53b   :  { %562 = vrot.lane.b32.xlu1 %v4164_v60, %s4014_s1 }
 0x597   :  { %v665_v0 = vpop.permute.xlu0 %664 }
 0x598   :  { %v667_v2 = vmul.f32 %v665_v0, %v662_v61 }
 0x59a   :  { %v4169_v3 = vadd.f32 %v668_v1, %v667_v2 }
 0x59c   :  { %v677_v4 = vrot.slane %v4169_v3, %v4083_v31 }
 0x59e   :  { %678 = vrot.lane.b32.xlu0 %v677_v4, %s4014_s1 }
 0x5ad   :  { %v563_v7 = vpop.permute.xlu1 %562 }
 0x5ae   :  { %566 = vst.msk [vmem:[#allocation2] sm:$0x3] %vm565_vm3, %v563_v7  ;;  %3452 = vmatmul.mubr.msk.f32.vlgmr.msra.gmra.mrb[6].mxu1 %vm151_vm2, %v563_v7 }
 0x5af   :  { %3726 = vmatpush3.bf16.msra.mxu1 %v4103_v59  ;;  %3473 = vmatprep.mubr.msk.f32.mxu1 %vm4010_vm1, %v4011_v13 }
 0x5b0   :  { %3727 = vmatprep.subr.bf16.mxu1 %v4009_v10 }
 0x5b3   :  { %3729 = vmatpush3.bf16.msra.mxu1 %v4110_v63 }
 0x5b4   :  { %3736 = vmatprep.subr.bf16.mxu1 %v4009_v10 }
 0x610   :  { %v679_v5 = vpop.permute.xlu0 %678 }
 0x611   :  { %3441 = vmatmul.mubr.msk.f32.vlgmr.msra.gmra.mrb[6].mxu0 %vm151_vm2, %v679_v5 }
 0x612   :  { %3720 = vmatpush3.bf16.msra.mxu0 %v4048_v6  ;;  %3462 = vmatprep.mubr.msk.f32.mxu0 %vm4010_vm1, %v4011_v13 }
 0x613   :  { %3721 = vmatprep.subr.bf16.mxu0 %v4009_v10 }
 0x616   :  { %3723 = vmatpush3.bf16.msra.mxu0 %v4052_v12 }
 0x617   :  { %3730 = vmatprep.subr.bf16.mxu0 %v4009_v10 }
 0x619   :  { %3463 = vmatmul.mubr.msk.f32.vlgmr.msra.gmra.mrb[8].mxu0 %vm151_vm2, %v679_v5 }
 0x61a   :  { %3732 = vmatpush3.bf16.msra.mxu0 %v4101_v55  ;;  %3484 = vmatprep.mubr.msk.f32.mxu0 %vm4010_vm1, %v4011_v13 }
 0x61b   :  { %3733 = vmatprep.subr.bf16.mxu0 %v4009_v10 }
 0x61e   :  { %3735 = vmatpush3.bf16.msra.mxu0 %v4106_v62 }
 0x61f   :  { %3742 = vmatprep.subr.bf16.mxu0 %v4009_v10 }
 0x681   :  { %v820_v8 = vpop.f32.mrb[6].mxu1 }
 0x682   :  { %v821_v11 = vadd.f32 %v820_v8, %v4132_v9  ;;  %v3453_v14 = vpop.f32.mrb[7].mxu1 }
 0x684   :  { %832 = vrot.lane.b32.xlu1 %v821_v11, %s4013_s0 }
 0x6e4   :  { %v748_v15 = vpop.f32.mrb[6].mxu0 }
 0x6e5   :  { %v749_v16 = vadd.f32 %v748_v15, %v4152_v22  ;;  %v3442_v19 = vpop.f32.mrb[7].mxu0 }
 0x6e7   :  { %v824_v23 = vadd.f32 %v821_v11, %v749_v16 }
 0x6e9   :  { %v3197_v24 = vmul.f32 -1.442695, %v824_v23 }
 0x6eb   :  { %3867 = vpow2.f32 %v3197_v24 }
 0x6ec   :  { %v921_v25 = vpop.f32.mrb[8].mxu0 }
 0x6ed   :  { %v922_v26 = vadd.f32 %v921_v25, %v4078_v30  ;;  %v3464_v27 = vpop.f32.mrb[9].mxu0 }
 0x6ef   :  { %v939_v28 = vrot.slane %v922_v26, %v4083_v31  ;;  %v925_v37 = vadd.f32 %v922_v26, %v4206_v36 }
 0x6f1   :  { %940 = vrot.lane.b32.xlu0 %v939_v28, %s4013_s0  ;;  %v3199_v38 = vmul.f32 -1.442695, %v925_v37 }
 0x6f5   :  { %v3868_v29 = vpop.eup %3867 }
 0x6f6   :  { %v828_v32 = vadd.f32 1.0, %v3868_v29  ;;  %v833_v34 = vpop.permute.xlu1 %832 }
 0x6f8   :  { %3869 = vrcp.f32 %v828_v32 }
 0x6f9   :  { %3871 = vpow2.f32 %v3199_v38 }
 0x702   :  { %v3870_v33 = vpop.eup %3869 }
 0x703   :  { %v835_v35 = vmul.f32 %v3870_v33, %v833_v34  ;;  %v3872_v40 = vpop.eup %3871  ;;  %v842_v52 = vsub.f32 1.0, %v3870_v33  ;;  %v848_v42 = vmul.f32 %v3870_v33, %v4164_v60  ;;  %v251_v33 = vcombine.high %v4206_v36, %v4206_v36 }
 0x704   :  { %v929_v43 = vadd.f32 1.0, %v3872_v40 }
 0x705   :  { %837 = vrot.lane.b32.xlu1 %v835_v35, %s4013_s0 }
 0x706   :  { %3873 = vrcp.f32 %v929_v43 }
 0x710   :  { %v3874_v44 = vpop.eup %3873 }
 0x711   :  { %v950_v57 = vsub.f32 1.0, %v3874_v44  ;;  %v956_v61 = vmul.f32 %v3874_v44, %v4169_v3 }
 0x763   :  { %v941_v45 = vpop.permute.xlu0 %940 }
 0x764   :  { %v943_v46 = vmul.f32 %v3874_v44, %v941_v45 }
 0x766   :  { %945 = vrot.lane.b32.xlu0 %v943_v46, %s4013_s0 }
 0x777   :  { %v838_v47 = vpop.permute.xlu1 %837 }
 0x778   :  { %v840_v48 = vadd.f32 %v838_v47, %v749_v16 }
 0x77a   :  { %3875 = vtanh.f32 %v840_v48 }
 0x784   :  { %v3876_v49 = vpop.eup %3875 }
 0x785   :  { %844 = vrot.lane.b32.xlu1 %v3876_v49, %s4014_s1 }
 0x7d8   :  { %v946_v41 = vpop.permute.xlu0 %945 }
 0x7d9   :  { %v948_v50 = vadd.f32 %v946_v41, %v4206_v36 }
 0x7db   :  { %3877 = vtanh.f32 %v948_v50 }
 0x7e5   :  { %v3878_v51 = vpop.eup %3877 }
 0x7e6   :  { %952 = vrot.lane.b32.xlu0 %v3878_v51, %s4014_s1 }
 0x7f7   :  { %v845_v53 = vpop.permute.xlu1 %844 }
 0x7f8   :  { %v847_v54 = vmul.f32 %v845_v53, %v842_v52 }
 0x7fa   :  { %v4214_v56 = vadd.f32 %v848_v42, %v847_v54 }
 0x7fc   :  { %851 = vrot.lane.b32.xlu1 %v4214_v56, %s4014_s1 }
 0x858   :  { %v953_v58 = vpop.permute.xlu0 %952 }
 0x859   :  { %v955_v0 = vmul.f32 %v953_v58, %v950_v57 }
 0x85b   :  { %v4219_v1 = vadd.f32 %v956_v61, %v955_v0 }
 0x85d   :  { %v965_v2 = vrot.slane %v4219_v1, %v4083_v31 }
 0x85f   :  { %966 = vrot.lane.b32.xlu0 %v965_v2, %s4014_s1 }
 0x86e   :  { %v852_v4 = vpop.permute.xlu1 %851 }
 0x86f   :  { %854 = vst.msk [vmem:[#allocation2 + $0x2] sm:$0x3] %vm565_vm3, %v852_v4  ;;  %3485 = vmatmul.mubr.msk.f32.vlgmr.msra.gmra.mrb[10].mxu0 %vm151_vm2, %v852_v4 }
 0x870   :  { %3744 = vmatpush3.bf16.msra.mxu0 %v4103_v59  ;;  %3506 = vmatprep.mubr.msk.f32.mxu0 %vm4010_vm1, %v4011_v13 }
 0x871   :  { %3745 = vmatprep.subr.bf16.mxu0 %v4009_v10 }
 0x874   :  { %3747 = vmatpush3.bf16.msra.mxu0 %v4110_v63 }
 0x875   :  { %3754 = vmatprep.subr.bf16.mxu0 %v4009_v10 }
 0x8d1   :  { %v967_v60 = vpop.permute.xlu0 %966 }
 0x8d2   :  { %3474 = vmatmul.mubr.msk.f32.vlgmr.msra.gmra.mrb[8].mxu1 %vm151_vm2, %v967_v60 }
 0x8d3   :  { %3738 = vmatpush3.bf16.msra.mxu1 %v4048_v6  ;;  %3495 = vmatprep.mubr.msk.f32.mxu1 %vm4010_vm1, %v4011_v13 }
 0x8d4   :  { %3739 = vmatprep.subr.bf16.mxu1 %v4009_v10 }
 0x8d7   :  { %3741 = vmatpush3.bf16.msra.mxu1 %v4052_v12 }
 0x8d8   :  { %3748 = vmatprep.subr.bf16.mxu1 %v4009_v10 }
 0x8da   :  { %3496 = vmatmul.mubr.msk.f32.vlgmr.msra.gmra.mrb[10].mxu1 %vm151_vm2, %v967_v60 }
 0x8db   :  { %3750 = vmatpush3.bf16.msra.mxu1 %v4101_v55  ;;  %3517 = vmatprep.mubr.msk.f32.mxu1 %vm4010_vm1, %v4011_v13 }
 0x8dc   :  { %3751 = vmatprep.subr.bf16.mxu1 %v4009_v10 }
 0x8df   :  { %3753 = vmatpush3.bf16.msra.mxu1 %v4106_v62 }
 0x8e0   :  { %3760 = vmatprep.subr.bf16.mxu1 %v4009_v10 }
 0x942   :  { %v1108_v3 = vpop.f32.mrb[10].mxu0 }
 0x943   :  { %v1109_v7 = vadd.f32 %v1108_v3, %v4132_v9  ;;  %v3486_v5 = vpop.f32.mrb[11].mxu0 }
 0x945   :  { %1120 = vrot.lane.b32.xlu1 %v1109_v7, %s4013_s0 }
 0x9a5   :  { %v1036_v8 = vpop.f32.mrb[8].mxu1 }
 0x9a6   :  { %v1037_v11 = vadd.f32 %v1036_v8, %v4152_v22  ;;  %v3475_v14 = vpop.f32.mrb[9].mxu1 }
 0x9a8   :  { %v1112_v15 = vadd.f32 %v1109_v7, %v1037_v11 }
 0x9aa   :  { %v3202_v16 = vmul.f32 -1.442695, %v1112_v15 }
 0x9ac   :  { %3879 = vpow2.f32 %v3202_v16 }
 0x9ad   :  { %v1209_v19 = vpop.f32.mrb[10].mxu1 }
 0x9ae   :  { %v1210_v23 = vadd.f32 %v1209_v19, %v4078_v30  ;;  %v3497_v24 = vpop.f32.mrb[11].mxu1 }
 0x9b0   :  { %v1227_v25 = vrot.slane %v1210_v23, %v4083_v31  ;;  %v1213_v34 = vadd.f32 %v1210_v23, %v251_v33 }
 0x9b2   :  { %1228 = vrot.lane.b32.xlu0 %v1227_v25, %s4013_s0  ;;  %v3204_v35 = vmul.f32 -1.442695, %v1213_v34 }
 0x9b6   :  { %v3880_v26 = vpop.eup %3879 }
 0x9b7   :  { %v1116_v27 = vadd.f32 1.0, %v3880_v26  ;;  %v1121_v29 = vpop.permute.xlu1 %1120 }
 0x9b9   :  { %3881 = vrcp.f32 %v1116_v27  ;;  %v4300_v27 = vrot.slane %v4090_v39, %v4083_v31 }
 0x9ba   :  { %3883 = vpow2.f32 %v3204_v35 }
 0x9c3   :  { %v3882_v28 = vpop.eup %3881 }
 0x9c4   :  { %v1123_v32 = vmul.f32 %v3882_v28, %v1121_v29  ;;  %v3884_v20 = vpop.eup %3883  ;;  %v1130_v49 = vsub.f32 1.0, %v3882_v28  ;;  %v1136_v50 = vmul.f32 %v3882_v28, %v4214_v56 }
 0x9c5   :  { %v1217_v37 = vadd.f32 1.0, %v3884_v20 }
 0x9c6   :  { %1125 = vrot.lane.b32.xlu1 %v1123_v32, %s4013_s0 }
 0x9c7   :  { %3885 = vrcp.f32 %v1217_v37 }
 0x9d1   :  { %v3886_v38 = vpop.eup %3885 }
 0x9d2   :  { %v1238_v53 = vsub.f32 1.0, %v3886_v38  ;;  %v1244_v54 = vmul.f32 %v3886_v38, %v4219_v1 }
 0xa24   :  { %v1229_v40 = vpop.permute.xlu0 %1228 }
 0xa25   :  { %v1231_v43 = vmul.f32 %v3886_v38, %v1229_v40 }
 0xa27   :  { %1233 = vrot.lane.b32.xlu0 %v1231_v43, %s4013_s0 }
 0xa38   :  { %v1126_v44 = vpop.permute.xlu1 %1125 }
 0xa39   :  { %v1128_v45 = vadd.f32 %v1126_v44, %v1037_v11 }
 0xa3b   :  { %3887 = vtanh.f32 %v1128_v45 }
 0xa45   :  { %v3888_v46 = vpop.eup %3887 }
 0xa46   :  { %1132 = vrot.lane.b32.xlu1 %v3888_v46, %s4014_s1 }
 0xa99   :  { %v1234_v47 = vpop.permute.xlu0 %1233 }
 0xa9a   :  { %v1236_v48 = vadd.f32 %v1234_v47, %v251_v33 }
 0xa9c   :  { %3889 = vtanh.f32 %v1236_v48 }
 0xaa6   :  { %v3890_v36 = vpop.eup %3889 }
 0xaa7   :  { %1240 = vrot.lane.b32.xlu0 %v3890_v36, %s4014_s1 }
 0xab8   :  { %v1133_v41 = vpop.permute.xlu1 %1132 }
 0xab9   :  { %v1135_v51 = vmul.f32 %v1133_v41, %v1130_v49 }
 0xabb   :  { %v4259_v52 = vadd.f32 %v1136_v50, %v1135_v51 }
 0xabd   :  { %1139 = vrot.lane.b32.xlu1 %v4259_v52, %s4014_s1 }
 0xb19   :  { %v1241_v42 = vpop.permute.xlu0 %1240 }
 0xb1a   :  { %v1243_v57 = vmul.f32 %v1241_v42, %v1238_v53 }
 0xb1c   :  { %v4264_v58 = vadd.f32 %v1244_v54, %v1243_v57 }
 0xb1e   :  { %v1253_v61 = vrot.slane %v4264_v58, %v4083_v31 }
 0xb20   :  { %1254 = vrot.lane.b32.xlu0 %v1253_v61, %s4014_s1 }
 0xb2f   :  { %v1140_v0 = vpop.permute.xlu1 %1139 }
 0xb30   :  { %1142 = vst.msk [vmem:[#allocation2 + $0x4] sm:$0x3] %vm565_vm3, %v1140_v0  ;;  %3518 = vmatmul.mubr.msk.f32.vlgmr.msra.gmra.mrb[12].mxu1 %vm151_vm2, %v1140_v0 }
 0xb31   :  { %3762 = vmatpush3.bf16.msra.mxu1 %v4103_v59  ;;  %3539 = vmatprep.mubr.msk.f32.mxu1 %vm4010_vm1, %v4011_v13 }
 0xb32   :  { %3763 = vmatprep.subr.bf16.mxu1 %v4009_v10 }
 0xb35   :  { %3765 = vmatpush3.bf16.msra.mxu1 %v4110_v63 }
 0xb36   :  { %3772 = vmatprep.subr.bf16.mxu1 %v4009_v10 }
 0xb92   :  { %v1255_v56 = vpop.permute.xlu0 %1254 }
 0xb93   :  { %3507 = vmatmul.mubr.msk.f32.vlgmr.msra.gmra.mrb[12].mxu0 %vm151_vm2, %v1255_v56 }
 0xb94   :  { %3756 = vmatpush3.bf16.msra.mxu0 %v4048_v6  ;;  %3528 = vmatprep.mubr.msk.f32.mxu0 %vm4010_vm1, %v4011_v13 }
 0xb95   :  { %3757 = vmatprep.subr.bf16.mxu0 %v4009_v10 }
 0xb98   :  { %3759 = vmatpush3.bf16.msra.mxu0 %v4052_v12 }
 0xb99   :  { %3766 = vmatprep.subr.bf16.mxu0 %v4009_v10 }
 0xb9b   :  { %3529 = vmatmul.mubr.msk.f32.vlgmr.msra.gmra.mrb[14].mxu0 %vm151_vm2, %v1255_v56 }
 0xb9c   :  { %3768 = vmatpush3.bf16.msra.mxu0 %v4101_v55  ;;  %3550 = vmatprep.mubr.msk.f32.mxu0 %vm4010_vm1, %v4011_v13 }
 0xb9d   :  { %3769 = vmatprep.subr.bf16.mxu0 %v4009_v10 }
 0xba0   :  { %3771 = vmatpush3.bf16.msra.mxu0 %v4106_v62 }
 0xba1   :  { %3778 = vmatprep.subr.bf16.mxu0 %v4009_v10 }
 0xc03   :  { %v1396_v1 = vpop.f32.mrb[12].mxu1 }
 0xc04   :  { %v1397_v2 = vadd.f32 %v1396_v1, %v4132_v9  ;;  %v3519_v4 = vpop.f32.mrb[13].mxu1 }
 0xc06   :  { %1408 = vrot.lane.b32.xlu1 %v1397_v2, %s4013_s0 }
 0xc66   :  { %v1324_v60 = vpop.f32.mrb[12].mxu0 }
 0xc67   :  { %v1325_v3 = vadd.f32 %v1324_v60, %v4152_v22  ;;  %v3508_v7 = vpop.f32.mrb[13].mxu0 }
 0xc69   :  { %v1400_v5 = vadd.f32 %v1397_v2, %v1325_v3 }
 0xc6b   :  { %v3207_v8 = vmul.f32 -1.442695, %v1400_v5 }
 0xc6d   :  { %3891 = vpow2.f32 %v3207_v8 }
 0xc6e   :  { %v1497_v11 = vpop.f32.mrb[14].mxu0 }
 0xc6f   :  { %v1498_v14 = vadd.f32 %v1497_v11, %v4078_v30  ;;  %v3530_v15 = vpop.f32.mrb[15].mxu0 }
 0xc71   :  { %v1515_v16 = vrot.slane %v1498_v14, %v4083_v31  ;;  %v1501_v28 = vadd.f32 %v1498_v14, %v4300_v27 }
 0xc73   :  { %1516 = vrot.lane.b32.xlu0 %v1515_v16, %s4013_s0  ;;  %v3209_v29 = vmul.f32 -1.442695, %v1501_v28 }
 0xc77   :  { %v3892_v19 = vpop.eup %3891 }
 0xc78   :  { %v1404_v23 = vadd.f32 1.0, %v3892_v19  ;;  %v1409_v25 = vpop.permute.xlu1 %1408 }
 0xc7a   :  { %3893 = vrcp.f32 %v1404_v23  ;;  %v267_v23 = vcombine.high %v4300_v27, %v4300_v27 }
 0xc7b   :  { %3895 = vpow2.f32 %v3209_v29 }
 0xc84   :  { %v3894_v24 = vpop.eup %3893 }
 0xc85   :  { %v1411_v26 = vmul.f32 %v3894_v24, %v1409_v25  ;;  %v3896_v32 = vpop.eup %3895  ;;  %v1418_v46 = vsub.f32 1.0, %v3894_v24  ;;  %v1424_v48 = vmul.f32 %v3894_v24, %v4259_v52 }
 0xc86   :  { %v1505_v33 = vadd.f32 1.0, %v3896_v32 }
 0xc87   :  { %1413 = vrot.lane.b32.xlu1 %v1411_v26, %s4013_s0 }
 0xc88   :  { %3897 = vrcp.f32 %v1505_v33 }
 0xc92   :  { %v3898_v34 = vpop.eup %3897 }
 0xc93   :  { %v1526_v41 = vsub.f32 1.0, %v3898_v34  ;;  %v1532_v51 = vmul.f32 %v3898_v34, %v4264_v58 }
 0xce5   :  { %v1517_v35 = vpop.permute.xlu0 %1516 }
 0xce6   :  { %v1519_v20 = vmul.f32 %v3898_v34, %v1517_v35 }
 0xce8   :  { %1521 = vrot.lane.b32.xlu0 %v1519_v20, %s4013_s0 }
 0xcf9   :  { %v1414_v37 = vpop.permute.xlu1 %1413 }
 0xcfa   :  { %v1416_v38 = vadd.f32 %v1414_v37, %v1325_v3 }
 0xcfc   :  { %3899 = vtanh.f32 %v1416_v38 }
 0xd06   :  { %v3900_v40 = vpop.eup %3899 }
 0xd07   :  { %1420 = vrot.lane.b32.xlu1 %v3900_v40, %s4014_s1 }
 0xd5a   :  { %v1522_v43 = vpop.permute.xlu0 %1521 }
 0xd5b   :  { %v1524_v44 = vadd.f32 %v1522_v43, %v4300_v27 }
 0xd5d   :  { %3901 = vtanh.f32 %v1524_v44 }
 0xd67   :  { %v3902_v45 = vpop.eup %3901 }
 0xd68   :  { %1528 = vrot.lane.b32.xlu0 %v3902_v45, %s4014_s1 }
 0xd79   :  { %v1421_v47 = vpop.permute.xlu1 %1420 }
 0xd7a   :  { %v1423_v36 = vmul.f32 %v1421_v47, %v1418_v46 }
 0xd7c   :  { %v4308_v49 = vadd.f32 %v1424_v48, %v1423_v36 }
 0xd7e   :  { %1427 = vrot.lane.b32.xlu1 %v4308_v49, %s4014_s1 }
 0xdda   :  { %v1529_v50 = vpop.permute.xlu0 %1528 }
 0xddb   :  { %v1531_v53 = vmul.f32 %v1529_v50, %v1526_v41 }
 0xddd   :  { %v4313_v42 = vadd.f32 %v1532_v51, %v1531_v53 }
 0xddf   :  { %v1541_v54 = vrot.slane %v4313_v42, %v4083_v31 }
 0xde1   :  { %1542 = vrot.lane.b32.xlu0 %v1541_v54, %s4014_s1 }
 0xdf0   :  { %v1428_v57 = vpop.permute.xlu1 %1427 }
 0xdf1   :  { %1430 = vst.msk [vmem:[#allocation2 + $0x6] sm:$0x3] %vm565_vm3, %v1428_v57  ;;  %3551 = vmatmul.mubr.msk.f32.vlgmr.msra.gmra.mrb[16].mxu0 %vm151_vm2, %v1428_v57 }
 0xdf2   :  { %3780 = vmatpush3.bf16.msra.mxu0 %v4103_v59  ;;  %3572 = vmatprep.mubr.msk.f32.mxu0 %vm4010_vm1, %v4011_v13 }
 0xdf3   :  { %3781 = vmatprep.subr.bf16.mxu0 %v4009_v10 }
 0xdf6   :  { %3783 = vmatpush3.bf16.msra.mxu0 %v4110_v63 }
 0xdf7   :  { %3790 = vmatprep.subr.bf16.mxu0 %v4009_v10 }
 0xe53   :  { %v1543_v52 = vpop.permute.xlu0 %1542 }
 0xe54   :  { %3540 = vmatmul.mubr.msk.f32.vlgmr.msra.gmra.mrb[14].mxu1 %vm151_vm2, %v1543_v52 }
 0xe55   :  { %3774 = vmatpush3.bf16.msra.mxu1 %v4048_v6  ;;  %3561 = vmatprep.mubr.msk.f32.mxu1 %vm4010_vm1, %v4011_v13 }
 0xe56   :  { %3775 = vmatprep.subr.bf16.mxu1 %v4009_v10 }
 0xe59   :  { %3777 = vmatpush3.bf16.msra.mxu1 %v4052_v12 }
 0xe5a   :  { %3784 = vmatprep.subr.bf16.mxu1 %v4009_v10 }
 0xe5c   :  { %3562 = vmatmul.mubr.msk.f32.vlgmr.msra.gmra.mrb[16].mxu1 %vm151_vm2, %v1543_v52 }
 0xe5d   :  { %3786 = vmatpush3.bf16.msra.mxu1 %v4101_v55  ;;  %3583 = vmatprep.mubr.msk.f32.mxu1 %vm4010_vm1, %v4011_v13 }
 0xe5e   :  { %3787 = vmatprep.subr.bf16.mxu1 %v4009_v10 }
 0xe61   :  { %3789 = vmatpush3.bf16.msra.mxu1 %v4106_v62 }
 0xe62   :  { %3796 = vmatprep.subr.bf16.mxu1 %v4009_v10 }
 0xec4   :  { %v1684_v58 = vpop.f32.mrb[16].mxu0 }
 0xec5   :  { %v1685_v61 = vadd.f32 %v1684_v58, %v4132_v9  ;;  %v3552_v0 = vpop.f32.mrb[17].mxu0 }
 0xec7   :  { %1696 = vrot.lane.b32.xlu0 %v1685_v61, %s4013_s0 }
 0xf27   :  { %v1612_v56 = vpop.f32.mrb[14].mxu1 }
 0xf28   :  { %v1613_v1 = vadd.f32 %v1612_v56, %v4152_v22  ;;  %v3541_v2 = vpop.f32.mrb[15].mxu1 }
 0xf2a   :  { %v1688_v4 = vadd.f32 %v1685_v61, %v1613_v1 }
 0xf2c   :  { %v3212_v60 = vmul.f32 -1.442695, %v1688_v4 }
 0xf2e   :  { %3903 = vpow2.f32 %v3212_v60 }
 0xf2f   :  { %v1785_v3 = vpop.f32.mrb[16].mxu1 }
 0xf30   :  { %v1786_v7 = vadd.f32 %v1785_v3, %v4078_v30  ;;  %v3563_v5 = vpop.f32.mrb[17].mxu1 }
 0xf32   :  { %v1803_v8 = vrot.slane %v1786_v7, %v4083_v31  ;;  %v1789_v24 = vadd.f32 %v1786_v7, %v267_v23 }
 0xf34   :  { %1804 = vrot.lane.b32.xlu1 %v1803_v8, %s4013_s0  ;;  %v3214_v25 = vmul.f32 -1.442695, %v1789_v24 }
 0xf38   :  { %v3904_v11 = vpop.eup %3903 }
 0xf39   :  { %v1692_v14 = vadd.f32 1.0, %v3904_v11  ;;  %v1697_v16 = vpop.permute.xlu0 %1696 }
 0xf3b   :  { %3905 = vrcp.f32 %v1692_v14  ;;  %v252_v14 = vcombine.high %v4090_v39, %v4090_v39 }
 0xf3c   :  { %3907 = vpow2.f32 %v3214_v25 }
 0xf45   :  { %v3906_v15 = vpop.eup %3905 }
 0xf46   :  { %v1699_v19 = vmul.f32 %v3906_v15, %v1697_v16  ;;  %v3908_v26 = vpop.eup %3907  ;;  %v1706_v40 = vsub.f32 1.0, %v3906_v15  ;;  %v1712_v44 = vmul.f32 %v3906_v15, %v4308_v49  ;;  %v4395_v15 = vrot.slane %v252_v14, %v4083_v31 }
 0xf47   :  { %v1793_v28 = vadd.f32 1.0, %v3908_v26 }
 0xf48   :  { %1701 = vrot.lane.b32.xlu0 %v1699_v19, %s4013_s0 }
 0xf49   :  { %3909 = vrcp.f32 %v1793_v28 }
 0xf53   :  { %v3910_v29 = vpop.eup %3909 }
 0xf54   :  { %v1814_v47 = vsub.f32 1.0, %v3910_v29  ;;  %v1820_v36 = vmul.f32 %v3910_v29, %v4313_v42 }
 0xfa6   :  { %v1805_v32 = vpop.permute.xlu1 %1804 }
 0xfa7   :  { %v1807_v33 = vmul.f32 %v3910_v29, %v1805_v32 }
 0xfa9   :  { %1809 = vrot.lane.b32.xlu1 %v1807_v33, %s4013_s0 }
 0xfba   :  { %v1702_v34 = vpop.permute.xlu0 %1701 }
 0xfbb   :  { %v1704_v35 = vadd.f32 %v1702_v34, %v1613_v1 }
 0xfbd   :  { %3911 = vtanh.f32 %v1704_v35 }
 0xfc7   :  { %v3912_v20 = vpop.eup %3911 }
 0xfc8   :  { %1708 = vrot.lane.b32.xlu0 %v3912_v20, %s4014_s1 }
0x101b   :  { %v1810_v37 = vpop.permute.xlu1 %1809 }
0x101c   :  { %v1812_v38 = vadd.f32 %v1810_v37, %v267_v23 }
0x101e   :  { %3913 = vtanh.f32 %v1812_v38 }
0x1028   :  { %v3914_v27 = vpop.eup %3913 }
0x1029   :  { %1816 = vrot.lane.b32.xlu1 %v3914_v27, %s4014_s1 }
0x103a   :  { %v1709_v43 = vpop.permute.xlu0 %1708 }
0x103b   :  { %v1711_v45 = vmul.f32 %v1709_v43, %v1706_v40 }
0x103d   :  { %v4353_v46 = vadd.f32 %v1712_v44, %v1711_v45 }
0x103f   :  { %1715 = vrot.lane.b32.xlu0 %v4353_v46, %s4014_s1 }
0x109b   :  { %v1817_v48 = vpop.permute.xlu1 %1816 }
0x109c   :  { %v1819_v41 = vmul.f32 %v1817_v48, %v1814_v47 }
0x109e   :  { %v4358_v50 = vadd.f32 %v1820_v36, %v1819_v41 }
0x10a0   :  { %v1829_v51 = vrot.slane %v4358_v50, %v4083_v31 }
0x10a2   :  { %1830 = vrot.lane.b32.xlu1 %v1829_v51, %s4014_s1 }
0x10b1   :  { %v1716_v53 = vpop.permute.xlu0 %1715 }
0x10b2   :  { %1718 = vst.msk [vmem:[#allocation2 + $0x8] sm:$0x3] %vm565_vm3, %v1716_v53  ;;  %3584 = vmatmul.mubr.msk.f32.vlgmr.msra.gmra.mrb[18].mxu1 %vm151_vm2, %v1716_v53 }
0x10b3   :  { %3798 = vmatpush3.bf16.msra.mxu1 %v4103_v59  ;;  %3605 = vmatprep.mubr.msk.f32.mxu1 %vm4010_vm1, %v4011_v13 }
0x10b4   :  { %3799 = vmatprep.subr.bf16.mxu1 %v4009_v10 }
0x10b7   :  { %3801 = vmatpush3.bf16.msra.mxu1 %v4110_v63 }
0x10b8   :  { %3808 = vmatprep.subr.bf16.mxu1 %v4009_v10 }
0x1114   :  { %v1831_v49 = vpop.permute.xlu1 %1830 }
0x1115   :  { %3573 = vmatmul.mubr.msk.f32.vlgmr.msra.gmra.mrb[18].mxu0 %vm151_vm2, %v1831_v49 }
0x1116   :  { %3792 = vmatpush3.bf16.msra.mxu0 %v4048_v6  ;;  %3594 = vmatprep.mubr.msk.f32.mxu0 %vm4010_vm1, %v4011_v13 }
0x1117   :  { %3793 = vmatprep.subr.bf16.mxu0 %v4009_v10 }
0x111a   :  { %3795 = vmatpush3.bf16.msra.mxu0 %v4052_v12 }
0x111b   :  { %3802 = vmatprep.subr.bf16.mxu0 %v4009_v10 }
0x111d   :  { %3595 = vmatmul.mubr.msk.f32.vlgmr.msra.gmra.mrb[20].mxu0 %vm151_vm2, %v1831_v49 }
0x111e   :  { %3804 = vmatpush3.bf16.msra.mxu0 %v4101_v55  ;;  %3616 = vmatprep.mubr.msk.f32.mxu0 %vm4010_vm1, %v4011_v13 }
0x111f   :  { %3805 = vmatprep.subr.bf16.mxu0 %v4009_v10 }
0x1122   :  { %3807 = vmatpush3.bf16.msra.mxu0 %v4106_v62 }
0x1123   :  { %3814 = vmatprep.subr.bf16.mxu0 %v4009_v10 }
0x1185   :  { %v1972_v42 = vpop.f32.mrb[18].mxu1 }
0x1186   :  { %v1973_v54 = vadd.f32 %v1972_v42, %v4132_v9  ;;  %v3585_v57 = vpop.f32.mrb[19].mxu1 }
0x1188   :  { %1984 = vrot.lane.b32.xlu0 %v1973_v54, %s4013_s0 }
0x11e8   :  { %v1900_v52 = vpop.f32.mrb[18].mxu0 }
0x11e9   :  { %v1901_v58 = vadd.f32 %v1900_v52, %v4152_v22  ;;  %v3574_v61 = vpop.f32.mrb[19].mxu0 }
0x11eb   :  { %v1976_v0 = vadd.f32 %v1973_v54, %v1901_v58 }
0x11ed   :  { %v3217_v56 = vmul.f32 -1.442695, %v1976_v0 }
0x11ef   :  { %3915 = vpow2.f32 %v3217_v56  ;;  %v268_v56 = vcombine.high %v4395_v15, %v4395_v15 }
0x11f0   :  { %v2073_v1 = vpop.f32.mrb[20].mxu0 }
0x11f1   :  { %v2074_v2 = vadd.f32 %v2073_v1, %v4078_v30  ;;  %v3596_v4 = vpop.f32.mrb[21].mxu0 }
0x11f3   :  { %v2091_v60 = vrot.slane %v2074_v2, %v4083_v31  ;;  %v2077_v16 = vadd.f32 %v2074_v2, %v4395_v15 }
0x11f5   :  { %2092 = vrot.lane.b32.xlu1 %v2091_v60, %s4013_s0  ;;  %v3219_v19 = vmul.f32 -1.442695, %v2077_v16 }
0x11f9   :  { %v3916_v3 = vpop.eup %3915 }
0x11fa   :  { %v1980_v7 = vadd.f32 1.0, %v3916_v3  ;;  %v1985_v8 = vpop.permute.xlu0 %1984 }
0x11fc   :  { %3917 = vrcp.f32 %v1980_v7 }
0x11fd   :  { %3919 = vpow2.f32 %v3219_v19 }
0x1206   :  { %v3918_v5 = vpop.eup %3917 }
0x1207   :  { %v1987_v11 = vmul.f32 %v3918_v5, %v1985_v8  ;;  %v3920_v23 = vpop.eup %3919  ;;  %v1994_v20 = vsub.f32 1.0, %v3918_v5  ;;  %v2000_v38 = vmul.f32 %v3918_v5, %v4353_v46 }
0x1208   :  { %v2081_v24 = vadd.f32 1.0, %v3920_v23 }
0x1209   :  { %1989 = vrot.lane.b32.xlu0 %v1987_v11, %s4013_s0 }
0x120a   :  { %3921 = vrcp.f32 %v2081_v24 }
0x1214   :  { %v3922_v25 = vpop.eup %3921 }
0x1215   :  { %v2102_v43 = vsub.f32 1.0, %v3922_v25  ;;  %v2108_v45 = vmul.f32 %v3922_v25, %v4358_v50 }
0x1267   :  { %v2093_v26 = vpop.permute.xlu1 %2092 }
0x1268   :  { %v2095_v28 = vmul.f32 %v3922_v25, %v2093_v26 }
0x126a   :  { %2097 = vrot.lane.b32.xlu1 %v2095_v28, %s4013_s0 }
0x127b   :  { %v1990_v29 = vpop.permute.xlu0 %1989 }
0x127c   :  { %v1992_v32 = vadd.f32 %v1990_v29, %v1901_v58 }
0x127e   :  { %3923 = vtanh.f32 %v1992_v32 }
0x1288   :  { %v3924_v33 = vpop.eup %3923 }
0x1289   :  { %1996 = vrot.lane.b32.xlu0 %v3924_v33, %s4014_s1 }
0x12dc   :  { %v2098_v39 = vpop.permute.xlu1 %2097 }
0x12dd   :  { %v2100_v34 = vadd.f32 %v2098_v39, %v4395_v15 }
0x12df   :  { %3925 = vtanh.f32 %v2100_v34 }
0x12e9   :  { %v3926_v35 = vpop.eup %3925 }
0x12ea   :  { %2104 = vrot.lane.b32.xlu1 %v3926_v35, %s4014_s1 }
0x12fb   :  { %v1997_v37 = vpop.permute.xlu0 %1996 }
0x12fc   :  { %v1999_v27 = vmul.f32 %v1997_v37, %v1994_v20  ;;  %v2583_v37 = vld [vmem:[#allocation2] sm:$0xff] }
0x12fe   :  { %v4403_v40 = vadd.f32 %v2000_v38, %v1999_v27 }
0x1300   :  { %2003 = vrot.lane.b32.xlu0 %v4403_v40, %s4014_s1 }
0x135c   :  { %v2105_v44 = vpop.permute.xlu1 %2104 }
0x135d   :  { %v2107_v47 = vmul.f32 %v2105_v44, %v2102_v43 }
0x135f   :  { %v4408_v48 = vadd.f32 %v2108_v45, %v2107_v47 }
0x1361   :  { %v2117_v36 = vrot.slane %v4408_v48, %v4083_v31 }
0x1363   :  { %2118 = vrot.lane.b32.xlu1 %v2117_v36, %s4014_s1 }
0x1372   :  { %v2004_v41 = vpop.permute.xlu0 %2003 }
0x1373   :  { %2006 = vst.msk [vmem:[#allocation2 + $0xa] sm:$0x3] %vm565_vm3, %v2004_v41  ;;  %3617 = vmatmul.mubr.msk.f32.vlgmr.msra.gmra.mrb[22].mxu0 %vm151_vm2, %v2004_v41 }
0x1374   :  { %3816 = vmatpush3.bf16.msra.mxu0 %v4103_v59  ;;  %3638 = vmatprep.mubr.msk.f32.mxu0 %vm4010_vm1, %v4011_v13 }
0x1375   :  { %3817 = vmatprep.subr.bf16.mxu0 %v4009_v10 }
0x1378   :  { %3819 = vmatpush3.bf16.msra.mxu0 %v4110_v63 }
0x13d5   :  { %v2119_v46 = vpop.permute.xlu1 %2118 }
0x13d6   :  { %3606 = vmatmul.mubr.msk.f32.vlgmr.msra.gmra.mrb[20].mxu1 %vm151_vm2, %v2119_v46 }
0x13d7   :  { %3810 = vmatpush3.bf16.msra.mxu1 %v4048_v6  ;;  %3627 = vmatprep.mubr.msk.f32.mxu1 %vm4010_vm1, %v4011_v13 }
0x13d8   :  { %3811 = vmatprep.subr.bf16.mxu1 %v4009_v10 }
0x13db   :  { %3813 = vmatpush3.bf16.msra.mxu1 %v4052_v12 }
0x13dc   :  { %3820 = vmatprep.subr.bf16.mxu1 %v4009_v10 }
0x13de   :  { %3628 = vmatmul.mubr.msk.f32.vlgmr.msra.gmra.mrb[22].mxu1 %vm151_vm2, %v2119_v46 }
0x13df   :  { %3822 = vmatpush3.bf16.msra.mxu1 %v4101_v55  ;;  %3649 = vmatprep.mubr.msk.f32.mxu1 %vm4010_vm1, %v4011_v13 }
0x13e0   :  { %3823 = vmatprep.subr.bf16.mxu1 %v4009_v10 }
0x13e3   :  { %3825 = vmatpush3.bf16.msra.mxu1 %v4106_v62 }
0x13e4   :  { %3834 = vmatprep.subr.bf16.mxu1 %v4009_v10 }
0x1446   :  { %v2260_v6 = vpop.f32.mrb[22].mxu0 }
0x1447   :  { %v2261_v59 = vadd.f32 %v2260_v6, %v4132_v9  ;;  %v3618_v63 = vpop.f32.mrb[23].mxu0 }
0x1449   :  { %2272 = vrot.lane.b32.xlu0 %v2261_v59, %s4013_s0 }
0x14a9   :  { %v2188_v12 = vpop.f32.mrb[20].mxu1 }
0x14aa   :  { %v2189_v50 = vadd.f32 %v2188_v12, %v4152_v22  ;;  %v3607_v51 = vpop.f32.mrb[21].mxu1 }
0x14ac   :  { %v2264_v55 = vadd.f32 %v2261_v59, %v2189_v50 }
0x14ae   :  { %v3222_v53 = vmul.f32 -1.442695, %v2264_v55  ;;  %v43_v55 = vld [vmem:[#allocation3 + $0x90] sm:$0xff] }
0x14b0   :  { %3927 = vpow2.f32 %v3222_v53  ;;  %v44_v53 = vld [vmem:[#allocation3 + $0x98] sm:$0xff] }
0x14b1   :  { %v2361_v49 = vpop.f32.mrb[22].mxu1 }
0x14b2   :  { %v2362_v42 = vadd.f32 %v2361_v49, %v4078_v30  ;;  %v3629_v54 = vpop.f32.mrb[23].mxu1  ;;  %v3830_v49 = vpack.c.bf16 %v44_v53, %v43_v55 }
0x14b4   :  { %v2379_v62 = vrot.slane %v2362_v42, %v4083_v31  ;;  %v2365_v1 = vadd.f32 %v2362_v42, %v268_v56 }
0x14b6   :  { %2380 = vrot.lane.b32.xlu1 %v2379_v62, %s4013_s0  ;;  %v3224_v2 = vmul.f32 -1.442695, %v2365_v1 }
0x14ba   :  { %v3928_v57 = vpop.eup %3927 }
0x14bb   :  { %v2268_v52 = vadd.f32 1.0, %v3928_v57  ;;  %v2273_v61 = vpop.permute.xlu0 %2272 }
0x14bd   :  { %3929 = vrcp.f32 %v2268_v52 }
0x14be   :  { %3931 = vpow2.f32 %v3224_v2 }
0x14c7   :  { %v3930_v58 = vpop.eup %3929 }
0x14c8   :  { %v2275_v0 = vmul.f32 %v3930_v58, %v2273_v61  ;;  %v3932_v30 = vpop.eup %3931  ;;  %v2282_v19 = vsub.f32 1.0, %v3930_v58  ;;  %v2288_v24 = vmul.f32 %v3930_v58, %v4403_v40 }
0x14c9   :  { %v2369_v4 = vadd.f32 1.0, %v3932_v30 }
0x14ca   :  { %2277 = vrot.lane.b32.xlu0 %v2275_v0, %s4013_s0  ;;  %v4470_v0 = vld [vmem:[#allocation3 + $0xa8] sm:$0xff] }
0x14cb   :  { %3933 = vrcp.f32 %v2369_v4 }
0x14d5   :  { %v3934_v60 = vpop.eup %3933 }
0x14d6   :  { %v2390_v28 = vsub.f32 1.0, %v3934_v60  ;;  %v2396_v32 = vmul.f32 %v3934_v60, %v4408_v48 }
0x1528   :  { %v2381_v3 = vpop.permute.xlu1 %2380 }
0x1529   :  { %v2383_v7 = vmul.f32 %v3934_v60, %v2381_v3 }
0x152b   :  { %2385 = vrot.lane.b32.xlu1 %v2383_v7, %s4013_s0 }
0x153c   :  { %v2278_v5 = vpop.permute.xlu0 %2277 }
0x153d   :  { %v2280_v8 = vadd.f32 %v2278_v5, %v2189_v50  ;;  %v41_v50 = vld [vmem:[#allocation3 + $0x80] sm:$0xff] }
0x153f   :  { %3935 = vtanh.f32 %v2280_v8 }
0x1549   :  { %v3936_v11 = vpop.eup %3935 }
0x154a   :  { %2284 = vrot.lane.b32.xlu0 %v3936_v11, %s4014_s1 }
0x159d   :  { %v2386_v14 = vpop.permute.xlu1 %2385 }
0x159e   :  { %v2388_v16 = vadd.f32 %v2386_v14, %v268_v56 }
0x15a0   :  { %3937 = vtanh.f32 %v2388_v16 }
0x15aa   :  { %v3938_v15 = vpop.eup %3937 }
0x15ab   :  { %2392 = vrot.lane.b32.xlu1 %v3938_v15, %s4014_s1 }
0x15bc   :  { %v2285_v23 = vpop.permute.xlu0 %2284 }
0x15bd   :  { %v2287_v25 = vmul.f32 %v2285_v23, %v2282_v19  ;;  %v2708_v23 = vand.u32 127, %v47_v17 }
0x15bf   :  { %v2289_v26 = vadd.f32 %v2288_v24, %v2287_v25  ;;  %vm2709_vm4 = vcmp.lt.s32.totalorder %v2708_v23, 16 }
0x15c0   :  { %v4519_v24 = vsel %vm2709_vm4, 1.0, %v4011_v13 }
0x15c1   :  { %2291 = vrot.lane.b32.xlu0 %v2289_v26, %s4014_s1 }
0x161d   :  { %v2393_v29 = vpop.permute.xlu1 %2392 }
0x161e   :  { %v2395_v33 = vmul.f32 %v2393_v29, %v2390_v28 }
0x1620   :  { %v2397_v39 = vadd.f32 %v2396_v32, %v2395_v33 }
0x1622   :  { %v2405_v34 = vrot.slane %v2397_v39, %v4083_v31 }
0x1624   :  { %2406 = vrot.lane.b32.xlu1 %v2405_v34, %s4014_s1 }
0x1633   :  { %v2292_v35 = vpop.permute.xlu0 %2291 }
0x1634   :  { %2294 = vst.msk [vmem:[#allocation2 + $0xc] sm:$0x3] %vm565_vm3, %v2292_v35  ;;  %3650 = vmatmul.mubr.msk.f32.vlgmr.msra.gmra.mrb[24].mxu1 %vm151_vm2, %v2292_v35 }
0x1635   :  { %3671 = vmatprep.mubr.msk.f32.mxu1 %vm4010_vm1, %v4011_v13 }
0x1696   :  { %v2407_v20 = vpop.permute.xlu1 %2406 }
0x1697   :  { %3639 = vmatmul.mubr.msk.f32.vlgmr.msra.gmra.mrb[24].mxu0 %vm151_vm2, %v2407_v20 }
0x1698   :  { %3660 = vmatprep.mubr.msk.f32.mxu0 %vm151_vm2, %v2583_v37 }
0x1707   :  { %v2548_v38 = vpop.f32.mrb[24].mxu1 }
0x1708   :  { %v2549_v27 = vadd.f32 %v2548_v38, %v4132_v9  ;;  %v3651_v40 = vpop.f32.mrb[25].mxu1 }
0x170a   :  { %2560 = vrot.lane.b32.xlu0 %v2549_v27, %s4013_s0 }
0x176a   :  { %v2476_v43 = vpop.f32.mrb[24].mxu0 }
0x176b   :  { %v2477_v44 = vadd.f32 %v2476_v43, %v4152_v22  ;;  %v3640_v45 = vpop.f32.mrb[25].mxu0  ;;  %v42_v22 = vld [vmem:[#allocation3 + $0x88] sm:$0xff] }
0x176c   :  { %v3826_v51 = vpack.c.bf16 %v42_v22, %v41_v50 }
0x176d   :  { %v2552_v47 = vadd.f32 %v2549_v27, %v2477_v44 }
0x176e   :  { %3827 = vmatprep.subr.bf16.mxu0 %v3826_v51  ;;  %3836 = vmatpush3.bf16.msra.mxu1 %v3826_v51 }
0x176f   :  { %v3227_v48 = vmul.f32 -1.442695, %v2552_v47  ;;  %3829 = vmatpush3.bf16.msra.mxu0 %v3826_v51  ;;  %3837 = vmatprep.subr.bf16.mxu1 %v4009_v10  ;;  %v2587_v10 = vsub.s32 4, %v4064_v18 }
0x1770   :  { %3831 = vmatprep.subr.bf16.mxu0 %v3830_v49 }
0x1771   :  { %3939 = vpow2.f32 %v3227_v48  ;;  %v2588_v56 = vrot.slane %v4470_v0, %v2587_v10 }
0x1772   :  { %3839 = vmatpush3.bf16.msra.mxu1 %v3830_v49 }
0x1773   :  { %3833 = vmatpush3.bf16.msra.mxu0 %v3830_v49 }
0x177b   :  { %v3940_v36 = vpop.eup %3939 }
0x177c   :  { %v2556_v41 = vadd.f32 1.0, %v3940_v36  ;;  %v2561_v6 = vpop.permute.xlu0 %2560 }
0x177e   :  { %3941 = vrcp.f32 %v2556_v41 }
0x1788   :  { %v3942_v46 = vpop.eup %3941 }
0x1789   :  { %v2563_v59 = vmul.f32 %v3942_v46, %v2561_v6  ;;  %v2570_v42 = vsub.f32 1.0, %v3942_v46  ;;  %v2576_v62 = vmul.f32 %v3942_v46, %v2289_v26  ;;  %v4522_v26 = vsub.f32 1.0, %v4519_v24 }
0x178b   :  { %2565 = vrot.lane.b32.xlu1 %v2563_v59, %s4013_s0 }
0x17fd   :  { %v2566_v63 = vpop.permute.xlu1 %2565 }
0x17fe   :  { %v2568_v9 = vadd.f32 %v2566_v63, %v2477_v44 }
0x1800   :  { %3943 = vtanh.f32 %v2568_v9 }
0x180a   :  { %v3944_v12 = vpop.eup %3943 }
0x180b   :  { %2572 = vrot.lane.b32.xlu0 %v3944_v12, %s4014_s1 }
0x187d   :  { %v2573_v54 = vpop.permute.xlu0 %2572 }
0x187e   :  { %v2575_v57 = vmul.f32 %v2573_v54, %v2570_v42 }
0x1880   :  { %v4463_v52 = vadd.f32 %v2576_v62, %v2575_v57 }
0x1882   :  { %2579 = vrot.lane.b32.xlu1 %v4463_v52, %s4014_s1 }
0x18f4   :  { %v2580_v58 = vpop.permute.xlu1 %2579 }
0x18f5   :  { %2582 = vst.msk [vmem:[#allocation2 + $0xe] sm:$0x3] %vm565_vm3, %v2580_v58 }
0x18fc   :  { %v2584_v61 = vld [vmem:[#allocation2 + $0x8] sm:$0xff] }
0x18fd   :  { %3661 = vmatmul.mubr.msk.f32.vlgmr.msra.gmra.mrb[26].mxu0 %vm151_vm2, %v2584_v61 }
0x19d0   :  { %v3662_v1 = vpop.f32.mrb[26].mxu0 }
0x19d1   :  { %v2667_v2 = vadd.f32 %v3662_v1, %v2588_v56  ;;  %v2661_v30 = vpop.f32.mrb[27].mxu0 }
0x19d2   :  { %v2662_v4 = vadd.f32 %v2661_v30, %v2588_v56 }
0x19d3   :  { %v4474_v60 = vrot.slane %v2667_v2, %v4083_v31  ;;  %v2689_v8 = vcombine.high %v2667_v2, %v2667_v2 }
0x19d4   :  { %v2672_v3 = vcombine.high %v2662_v4, %v2662_v4  ;;  %v4477_v7 = vrot.slane %v2662_v4, %v4083_v31 }
0x19d5   :  { %2721 = vrot.lane.b32.xlu0 %v4474_v60, %s4014_s1  ;;  %v4483_v5 = vcombine.high %v4474_v60, %v4474_v60  ;;  %v4505_v15 = vrot.slane %v2689_v8, %v4083_v31 }
0x19d6   :  { %v4491_v11 = vcombine.high %v4477_v7, %v4477_v7  ;;  %v4494_v14 = vrot.slane %v2672_v3, %v4083_v31  ;;  %v2982_v23 = vrot.slane %v4477_v7, %v4083_v31 }
0x19d7   :  { %2723 = vrot.lane.b32.xlu1 %v4483_v5, %s4014_s1  ;;  %v4511_v19 = vcombine.high %v4505_v15, %v4505_v15 }
0x19d8   :  { %v4502_v16 = vcombine.high %v4494_v14, %v4494_v14 }
0x19d9   :  { %2713 = vrot.lane.b32.xlu0 %v4477_v7, %s4014_s1  ;;  %v3031_v7 = vrot.slane %v4511_v19, %v4083_v31 }
0x19db   :  { %2715 = vrot.lane.b32.xlu1 %v4491_v11, %s4014_s1 }
0x19dd   :  { %2717 = vrot.lane.b32.xlu0 %v4494_v14, %s4014_s1 }
0x19df   :  { %2719 = vrot.lane.b32.xlu1 %v4502_v16, %s4014_s1 }
0x19e1   :  { %2725 = vrot.lane.b32.xlu0 %v4505_v15, %s4014_s1 }
0x19e3   :  { %2727 = vrot.lane.b32.xlu1 %v4511_v19, %s4014_s1 }
0x1a47   :  { %v2722_v25 = vpop.permute.xlu0 %2721 }
0x1a48   :  { %v2741_v28 = vmul.f32 %v2722_v25, %v4511_v19  ;;  %v2996_v25 = vrot.slane %v4494_v14, %v4083_v31  ;;  %v3010_v14 = vrot.slane %v4474_v60, %v4083_v31 }
0x1a49   :  { %v2724_v29 = vpop.permute.xlu1 %2723 }
0x1a4a   :  { %v2749_v32 = vmul.f32 %v4519_v24, %v2741_v28  ;;  %v2742_v39 = vmul.f32 %v2724_v29, %v4511_v19  ;;  %v2789_v35 = vmul.f32 %v2741_v28, %v4522_v26  ;;  %v3003_v28 = vrot.slane %v4502_v16, %v4083_v31 }
0x1a4b   :  { %v2714_v33 = vpop.permute.xlu0 %2713  ;;  %v3017_v29 = vrot.slane %v4483_v5, %v4083_v31  ;;  %v3024_v5 = vrot.slane %v4505_v15, %v4083_v31 }
0x1a4c   :  { %v2737_v34 = vmul.f32 %v2714_v33, %v4511_v19  ;;  %v2765_v17 = vsel %vm565_vm3, %v2749_v32, 0.0  ;;  %v2805_v27 = vsel %vm565_vm3, %v2789_v35, 0.0  ;;  %v2750_v40 = vmul.f32 %v4519_v24, %v2742_v39 }
0x1a4d   :  { %v2716_v13 = vpop.permute.xlu1 %2715  ;;  %2766 = vadd.xlane.f32.xlu1 %v2765_v17  ;;  %v2790_v48 = vmul.f32 %v2742_v39, %v4522_v26  ;;  %v2989_v32 = vrot.slane %v4491_v11, %v4083_v31 }
0x1a4e   :  { %v2745_v20 = vmul.f32 %v4519_v24, %v2737_v34  ;;  %v2785_v43 = vmul.f32 %v2737_v34, %v4522_v26  ;;  %v2738_v44 = vmul.f32 %v2716_v13, %v4511_v19  ;;  %v2768_v46 = vsel %vm565_vm3, %v2750_v40, 0.0 }
0x1a4f   :  { %v2718_v37 = vpop.permute.xlu0 %2717  ;;  %v2808_v63 = vsel %vm565_vm3, %v2790_v48, 0.0 }
0x1a50   :  { %v2753_v38 = vsel %vm565_vm3, %v2745_v20, 0.0  ;;  %v2739_v36 = vmul.f32 %v2718_v37, %v4511_v19  ;;  %v2793_v6 = vsel %vm565_vm3, %v2785_v43, 0.0  ;;  %v2746_v50 = vmul.f32 %v4519_v24, %v2738_v44 }
0x1a51   :  { %2754 = vadd.xlane.f32.xlu0 %v2753_v38  ;;  %2806 = vadd.xlane.f32.xlu1 %v2805_v27  ;;  %v2720_v45 = vpop.permute.xlu1 %2719  ;;  %v2786_v51 = vmul.f32 %v2738_v44, %v4522_v26 }
0x1a52   :  { %v2747_v12 = vmul.f32 %v4519_v24, %v2739_v36  ;;  %v2756_v49 = vsel %vm565_vm3, %v2746_v50, 0.0  ;;  %v2787_v42 = vmul.f32 %v2739_v36, %v4522_v26  ;;  %v2740_v54 = vmul.f32 %v2720_v45, %v4511_v19 }
0x1a53   :  { %v2726_v47 = vpop.permute.xlu0 %2725  ;;  %v2796_v62 = vsel %vm565_vm3, %v2786_v51, 0.0 }
0x1a54   :  { %v2743_v41 = vmul.f32 %v2726_v47, %v4511_v19  ;;  %v2759_v53 = vsel %vm565_vm3, %v2747_v12, 0.0  ;;  %v2799_v57 = vsel %vm565_vm3, %v2787_v42, 0.0  ;;  %v2748_v1 = vmul.f32 %v4519_v24, %v2740_v54 }
0x1a55   :  { %2769 = vadd.xlane.f32.xlu0 %v2768_v46  ;;  %2794 = vadd.xlane.f32.xlu1 %v2793_v6  ;;  %v2728_v22 = vpop.permute.xlu1 %2727  ;;  %v2788_v30 = vmul.f32 %v2740_v54, %v4522_v26 }
0x1a56   :  { %v2751_v59 = vmul.f32 %v4519_v24, %v2743_v41  ;;  %v2744_v55 = vmul.f32 %v2728_v22, %v4511_v19  ;;  %v2791_v58 = vmul.f32 %v2743_v41, %v4522_v26  ;;  %v2762_v2 = vsel %vm565_vm3, %v2748_v1, 0.0 }
0x1a57   :  { %v2802_v4 = vsel %vm565_vm3, %v2788_v30, 0.0 }
0x1a58   :  { %v2771_v9 = vsel %vm565_vm3, %v2751_v59, 0.0  ;;  %v2752_v61 = vmul.f32 %v4519_v24, %v2744_v55  ;;  %v2811_v10 = vsel %vm565_vm3, %v2791_v58, 0.0  ;;  %v2792_v3 = vmul.f32 %v2744_v55, %v4522_v26 }
0x1a59   :  { %2809 = vadd.xlane.f32.xlu0 %v2808_v63  ;;  %2772 = vadd.xlane.f32.xlu1 %v2771_v9 }
0x1a5a   :  { %v2774_v56 = vsel %vm565_vm3, %v2752_v61, 0.0  ;;  %v2814_v8 = vsel %vm565_vm3, %v2792_v3, 0.0 }
0x1a5d   :  { %2760 = vadd.xlane.f32.xlu0 %v2759_v53  ;;  %2757 = vadd.xlane.f32.xlu1 %v2756_v49 }
0x1a61   :  { %2797 = vadd.xlane.f32.xlu0 %v2796_v62  ;;  %2800 = vadd.xlane.f32.xlu1 %v2799_v57 }
0x1a65   :  { %2812 = vadd.xlane.f32.xlu1 %v2811_v10  ;;  %2775 = vadd.xlane.f32.xlu0 %v2774_v56 }
0x1a69   :  { %2763 = vadd.xlane.f32.xlu0 %v2762_v2 }
0x1a6d   :  { %2803 = vadd.xlane.f32.xlu0 %v2802_v4 }
0x1a71   :  { %2815 = vadd.xlane.f32.xlu0 %v2814_v8 }
0x1a76   :  { %3032 = vrot.lane.b32.xlu1 %v2982_v23, %s4013_s0 }
0x1a7a   :  { %3036 = vrot.lane.b32.xlu1 %v2996_v25, %s4013_s0 }
0x1a7e   :  { %3038 = vrot.lane.b32.xlu1 %v3003_v28, %s4013_s0 }
0x1a82   :  { %3042 = vrot.lane.b32.xlu1 %v3017_v29, %s4013_s0 }
0x1a86   :  { %3046 = vrot.lane.b32.xlu1 %v3031_v7, %s4013_s0 }
0x1a87   :  { %3034 = vrot.lane.b32.xlu0 %v2989_v32, %s4013_s0 }
0x1a8a   :  { %3157 = vrot.lane.b32.xlu1 %v4070_v21, %s4014_s1 }
0x1a8b   :  { %3040 = vrot.lane.b32.xlu0 %v3010_v14, %s4013_s0 }
0x1a8f   :  { %3044 = vrot.lane.b32.xlu0 %v3024_v5, %s4013_s0 }
0x1a93   :  { %3153 = vrot.lane.b32.xlu0 %v4070_v21, %s4013_s0 }
0x1ada   :  { %v2767_v11 = vpop.xlane.xlu1 %2766 }
0x1adb   :  { %v2781_v40 = vmul.f32 0.25, %v2767_v11 }
0x1add   :  { %v2830_v59 = vsel %vm2825_vm5, %v2781_v40, -inf }
0x1ade   :  { %v2755_v16 = vpop.xlane.xlu0 %2754  ;;  %v2807_v19 = vpop.xlane.xlu1 %2806 }
0x1adf   :  { %v2777_v38 = vmul.f32 0.25, %v2755_v16  ;;  %v4609_v57 = vmul.f32 0.25, %v2807_v19 }
0x1ae1   :  { %v2826_v48 = vsel %vm2825_vm5, %v2777_v38, -inf  ;;  %v2893_v29 = vsel %vm2825_vm5, %v4609_v57, -inf }
0x1ae2   :  { %v2770_v33 = vpop.xlane.xlu0 %2769  ;;  %v2795_v39 = vpop.xlane.xlu1 %2794  ;;  %v2831_v50 = vmax.f32 %v2826_v48, %v2830_v59 }
0x1ae3   :  { %v4592_v27 = vmul.f32 0.25, %v2770_v33  ;;  %v2817_v22 = vmul.f32 0.25, %v2795_v39 }
0x1ae5   :  { %v2832_v36 = vsel %vm2825_vm5, %v4592_v27, -inf  ;;  %v2889_v10 = vsel %vm2825_vm5, %v2817_v22, -inf }
0x1ae6   :  { %v2810_v34 = vpop.xlane.xlu0 %2809  ;;  %v2773_v60 = vpop.xlane.xlu1 %2772  ;;  %v2894_v5 = vmax.f32 %v2889_v10, %v2893_v29 }
0x1ae7   :  { %v4594_v43 = vmul.f32 0.25, %v2773_v60  ;;  %v4611_v58 = vmul.f32 0.25, %v2810_v34 }
0x1ae9   :  { %v2834_v63 = vsel %vm2825_vm5, %v4594_v43, -inf  ;;  %v2895_v7 = vsel %vm2825_vm5, %v4611_v58, -inf }
0x1aea   :  { %v2761_v17 = vpop.xlane.xlu0 %2760  ;;  %v2758_v35 = vpop.xlane.xlu1 %2757 }
0x1aeb   :  { %v2778_v20 = vmul.f32 0.25, %v2758_v35  ;;  %v2779_v31 = vmul.f32 0.25, %v2761_v17 }
0x1aed   :  { %v2827_v44 = vsel %vm2825_vm5, %v2778_v20, -inf  ;;  %v2828_v41 = vsel %vm2825_vm5, %v2779_v31, -inf }
0x1aee   :  { %v2798_v13 = vpop.xlane.xlu0 %2797  ;;  %v2801_v15 = vpop.xlane.xlu1 %2800  ;;  %v2833_v6 = vmax.f32 %v2827_v44, %v2832_v36  ;;  %v2835_v51 = vmax.f32 %v2828_v41, %v2834_v63 }
0x1aef   :  { %v2818_v42 = vmul.f32 0.25, %v2798_v13  ;;  %v2819_v30 = vmul.f32 0.25, %v2801_v15 }
0x1af0   :  { %v2838_v54 = vmax.f32 %v2831_v50, %v2833_v6 }
0x1af1   :  { %v2890_v2 = vsel %vm2825_vm5, %v2818_v42, -inf  ;;  %v2891_v39 = vsel %vm2825_vm5, %v2819_v30, -inf }
0x1af2   :  { %v2776_v37 = vpop.xlane.xlu0 %2775  ;;  %v2813_v55 = vpop.xlane.xlu1 %2812  ;;  %v2896_v33 = vmax.f32 %v2890_v2, %v2895_v7 }
0x1af3   :  { %v4597_v45 = vmul.f32 0.25, %v2776_v37  ;;  %v4613_v61 = vmul.f32 0.25, %v2813_v55 }
0x1af4   :  { %v2901_v15 = vmax.f32 %v2894_v5, %v2896_v33 }
0x1af5   :  { %v2836_v9 = vsel %vm2825_vm5, %v4597_v45, -inf  ;;  %v2897_v32 = vsel %vm2825_vm5, %v4613_v61, -inf }
0x1af6   :  { %v2764_v47 = vpop.xlane.xlu0 %2763  ;;  %v2898_v17 = vmax.f32 %v2891_v39, %v2897_v32 }
0x1af7   :  { %v2780_v46 = vmul.f32 0.25, %v2764_v47 }
0x1af9   :  { %v2829_v12 = vsel %vm2825_vm5, %v2780_v46, -inf }
0x1afa   :  { %v2837_v53 = vmax.f32 %v2829_v12, %v2836_v9  ;;  %v2804_v49 = vpop.xlane.xlu0 %2803 }
0x1afb   :  { %v2820_v4 = vmul.f32 0.25, %v2804_v49 }
0x1afc   :  { %v2839_v62 = vmax.f32 %v2835_v51, %v2837_v53 }
0x1afd   :  { %v2892_v35 = vsel %vm2825_vm5, %v2820_v4, -inf }
0x1afe   :  { %v2840_v56 = vmax.f32 %v2838_v54, %v2839_v62  ;;  %v2816_v1 = vpop.xlane.xlu0 %2815 }
0x1aff   :  { %v4617_v3 = vmul.f32 0.25, %v2816_v1 }
0x1b00   :  { %v2841_v8 = vsub.f32 %v2777_v38, %v2840_v56  ;;  %v2842_v23 = vsub.f32 %v2778_v20, %v2840_v56  ;;  %v2843_v25 = vsub.f32 %v2779_v31, %v2840_v56  ;;  %v2844_v28 = vsub.f32 %v2780_v46, %v2840_v56 }
0x1b01   :  { %v2845_v14 = vsub.f32 %v2781_v40, %v2840_v56  ;;  %v2846_v34 = vsub.f32 %v4592_v27, %v2840_v56  ;;  %v2899_v13 = vsel %vm2825_vm5, %v4617_v3, -inf  ;;  %v2847_v20 = vsub.f32 %v4594_v43, %v2840_v56 }
0x1b02   :  { %v2849_v11 = vmul.f32 1.442695, %v2841_v8  ;;  %v2851_v16 = vmul.f32 1.442695, %v2842_v23  ;;  %v2853_v19 = vmul.f32 1.442695, %v2843_v25  ;;  %v2900_v38 = vmax.f32 %v2892_v35, %v2899_v13 }
0x1b03   :  { %v2855_v60 = vmul.f32 1.442695, %v2844_v28  ;;  %v2857_v37 = vmul.f32 1.442695, %v2845_v14  ;;  %v2848_v31 = vsub.f32 %v4597_v45, %v2840_v56  ;;  %v2859_v40 = vmul.f32 1.442695, %v2846_v34 }
0x1b04   :  { %3945 = vpow2.f32 %v2849_v11  ;;  %v2902_v27 = vmax.f32 %v2898_v17, %v2900_v38  ;;  %v2861_v44 = vmul.f32 1.442695, %v2847_v20 }
0x1b05   :  { %3947 = vpow2.f32 %v2851_v16  ;;  %v2863_v48 = vmul.f32 1.442695, %v2848_v31 }
0x1b06   :  { %3949 = vpow2.f32 %v2853_v19  ;;  %v2903_v47 = vmax.f32 %v2901_v15, %v2902_v27 }
0x1b07   :  { %3951 = vpow2.f32 %v2855_v60 }
0x1b08   :  { %3953 = vpow2.f32 %v2857_v37  ;;  %v2904_v36 = vsub.f32 %v2817_v22, %v2903_v47  ;;  %v2905_v41 = vsub.f32 %v2818_v42, %v2903_v47  ;;  %v2906_v46 = vsub.f32 %v2819_v30, %v2903_v47 }
0x1b09   :  { %3955 = vpow2.f32 %v2859_v40  ;;  %v2907_v6 = vsub.f32 %v2820_v4, %v2903_v47  ;;  %v2908_v43 = vsub.f32 %v4609_v57, %v2903_v47  ;;  %v2909_v12 = vsub.f32 %v4611_v58, %v2903_v47 }
0x1b0a   :  { %3957 = vpow2.f32 %v2861_v44  ;;  %v2912_v59 = vmul.f32 1.442695, %v2904_v36  ;;  %v2914_v63 = vmul.f32 1.442695, %v2905_v41  ;;  %v2916_v45 = vmul.f32 1.442695, %v2906_v46 }
0x1b0b   :  { %3959 = vpow2.f32 %v2863_v48  ;;  %v2918_v50 = vmul.f32 1.442695, %v2907_v6  ;;  %v2910_v49 = vsub.f32 %v4613_v61, %v2903_v47  ;;  %v2920_v42 = vmul.f32 1.442695, %v2908_v43  ;;  %v3033_v43 = vpop.permute.xlu1 %3032 }
0x1b0c   :  { %3961 = vpow2.f32 %v2912_v59  ;;  %v2911_v58 = vsub.f32 %v4617_v3, %v2903_v47  ;;  %v2922_v10 = vmul.f32 1.442695, %v2909_v12 }
0x1b0d   :  { %3963 = vpow2.f32 %v2914_v63  ;;  %v2924_v30 = vmul.f32 1.442695, %v2910_v49 }
0x1b0e   :  { %v4633_v9 = vpop.eup %3945  ;;  %3965 = vpow2.f32 %v2916_v45  ;;  %v2926_v23 = vmul.f32 1.442695, %v2911_v58 }
0x1b0f   :  { %v4636_v51 = vpop.eup %3947  ;;  %v2865_v22 = vsel %vm2825_vm5, %v4633_v9, 0.0  ;;  %3967 = vpow2.f32 %v2918_v50  ;;  %v3037_v50 = vpop.permute.xlu1 %3036 }
0x1b10   :  { %v4640_v55 = vpop.eup %3949  ;;  %v2866_v53 = vsel %vm2825_vm5, %v4636_v51, 0.0  ;;  %3969 = vpow2.f32 %v2920_v42 }
0x1b11   :  { %v3952_v54 = vpop.eup %3951  ;;  %v2867_v62 = vadd.f32 %v2866_v53, %v2865_v22  ;;  %v2868_v57 = vsel %vm2825_vm5, %v4640_v55, 0.0  ;;  %3971 = vpow2.f32 %v2922_v10 }
0x1b12   :  { %v3954_v56 = vpop.eup %3953  ;;  %v2870_v2 = vsel %vm2825_vm5, %v3952_v54, 0.0  ;;  %3973 = vpow2.f32 %v2924_v30 }
0x1b13   :  { %v2869_v1 = vadd.f32 %v2868_v57, %v2867_v62  ;;  %v3956_v4 = vpop.eup %3955  ;;  %v2872_v8 = vsel %vm2825_vm5, %v3954_v56, 0.0  ;;  %3975 = vpow2.f32 %v2926_v23 }
0x1b14   :  { %v3958_v25 = vpop.eup %3957  ;;  %v2874_v3 = vsel %vm2825_vm5, %v3956_v4, 0.0 }
0x1b15   :  { %v2871_v61 = vadd.f32 %v2870_v2, %v2869_v1  ;;  %v4650_v29 = vpop.eup %3959  ;;  %v2876_v5 = vsel %vm2825_vm5, %v3958_v25, 0.0 }
0x1b16   :  { %v3962_v7 = vpop.eup %3961  ;;  %v2878_v35 = vsel %vm2825_vm5, %v4650_v29, 0.0 }
0x1b17   :  { %v2873_v28 = vadd.f32 %v2872_v8, %v2871_v61  ;;  %v3964_v14 = vpop.eup %3963  ;;  %v2928_v11 = vsel %vm2825_vm5, %v3962_v7, 0.0 }
0x1b18   :  { %v3966_v16 = vpop.eup %3965  ;;  %v2929_v33 = vsel %vm2825_vm5, %v3964_v14, 0.0 }
0x1b19   :  { %v2875_v32 = vadd.f32 %v2874_v3, %v2873_v28  ;;  %v3968_v39 = vpop.eup %3967  ;;  %v2930_v34 = vadd.f32 %v2929_v33, %v2928_v11  ;;  %v2931_v60 = vsel %vm2825_vm5, %v3966_v16, 0.0  ;;  %v3039_v3 = vpop.permute.xlu1 %3038 }
0x1b1a   :  { %v3970_v17 = vpop.eup %3969  ;;  %v2933_v37 = vsel %vm2825_vm5, %v3968_v39, 0.0 }
0x1b1b   :  { %v2877_v19 = vadd.f32 %v2876_v5, %v2875_v32  ;;  %v2932_v13 = vadd.f32 %v2931_v60, %v2930_v34  ;;  %v3972_v38 = vpop.eup %3971  ;;  %v2935_v15 = vsel %vm2825_vm5, %v3970_v17, 0.0 }
0x1b1c   :  { %v3974_v40 = vpop.eup %3973  ;;  %v2937_v44 = vsel %vm2825_vm5, %v3972_v38, 0.0 }
0x1b1d   :  { %v2879_v20 = vadd.f32 %v2878_v35, %v2877_v19  ;;  %v2934_v31 = vadd.f32 %v2933_v37, %v2932_v13  ;;  %v3976_v47 = vpop.eup %3975  ;;  %v2939_v36 = vsel %vm2825_vm5, %v3974_v40, 0.0 }
0x1b1e   :  { %v2941_v46 = vsel %vm2825_vm5, %v3976_v47, 0.0 }
0x1b1f   :  { %v2936_v27 = vadd.f32 %v2935_v15, %v2934_v31  ;;  %3977 = vrcp.f32 %v2879_v20 }
0x1b21   :  { %v2938_v48 = vadd.f32 %v2937_v44, %v2936_v27 }
0x1b23   :  { %v2940_v41 = vadd.f32 %v2939_v36, %v2938_v48 }
0x1b25   :  { %v2942_v6 = vadd.f32 %v2941_v46, %v2940_v41 }
0x1b27   :  { %3979 = vrcp.f32 %v2942_v6 }
0x1b29   :  { %v3978_v59 = vpop.eup %3977 }
0x1b2a   :  { %v2884_v63 = vmul.f32 %v3978_v59, %v3952_v54  ;;  %v2881_v45 = vmul.f32 %v3978_v59, %v4633_v9  ;;  %v2882_v12 = vmul.f32 %v3978_v59, %v4636_v51  ;;  %v2883_v22 = vmul.f32 %v3978_v59, %v4640_v55  ;;  %v3035_v9 = vpop.permute.xlu0 %3034 }
0x1b2b   :  { %v2886_v53 = vmul.f32 %v3978_v59, %v3956_v4  ;;  %v2885_v49 = vmul.f32 %v3978_v59, %v3954_v56  ;;  %v2887_v10 = vmul.f32 %v3978_v59, %v3958_v25 }
0x1b2c   :  { %v2955_v62 = vmul.f32 %v4519_v24, %v2884_v63  ;;  %v2952_v57 = vmul.f32 %v4519_v24, %v2881_v45  ;;  %v2953_v58 = vmul.f32 %v4519_v24, %v2882_v12  ;;  %v2954_v51 = vmul.f32 %v4519_v24, %v2883_v22 }
0x1b2d   :  { %v2957_v33 = vmul.f32 %v4519_v24, %v2886_v53 }
0x1b2e   :  { %v3041_v20 = vpop.permute.xlu0 %3040 }
0x1b31   :  { %v3980_v42 = vpop.eup %3979 }
0x1b32   :  { %v2947_v1 = vmul.f32 %v3980_v42, %v3968_v39  ;;  %v2944_v2 = vmul.f32 %v3980_v42, %v3962_v7  ;;  %v2945_v54 = vmul.f32 %v3980_v42, %v3964_v14  ;;  %v2946_v30 = vmul.f32 %v3980_v42, %v3966_v16  ;;  %v3045_v63 = vpop.permute.xlu0 %3044 }
0x1b33   :  { %v2949_v61 = vmul.f32 %v3980_v42, %v3972_v38  ;;  %v2948_v8 = vmul.f32 %v3980_v42, %v3970_v17  ;;  %v2950_v55 = vmul.f32 %v3980_v42, %v3974_v40  ;;  %v2956_v7 = vmul.f32 %v4519_v24, %v2885_v49 }
0x1b34   :  { %v2963_v56 = vmul.f32 %v2947_v1, %v4522_v26  ;;  %v2960_v4 = vmul.f32 %v2944_v2, %v4522_v26  ;;  %v2961_v23 = vmul.f32 %v2945_v54, %v4522_v26  ;;  %v2962_v28 = vmul.f32 %v2946_v30, %v4522_v26 }
0x1b35   :  { %v2965_v25 = vmul.f32 %v2949_v61, %v4522_v26  ;;  %v2964_v32 = vmul.f32 %v2948_v8, %v4522_v26  ;;  %v2951_v14 = vmul.f32 %v3980_v42, %v3976_v47  ;;  %v2888_v39 = vmul.f32 %v3978_v59, %v4650_v29  ;;  %v3043_v47 = vpop.permute.xlu1 %3042 }
0x1b36   :  { %v2971_v5 = vadd.f32 %v2963_v56, %v2955_v62  ;;  %v2968_v11 = vadd.f32 %v2960_v4, %v2952_v57  ;;  %v2969_v16 = vadd.f32 %v2961_v23, %v2953_v58  ;;  %v2970_v19 = vadd.f32 %v2962_v28, %v2954_v51 }
0x1b37   :  { %v2966_v34 = vmul.f32 %v2950_v55, %v4522_v26  ;;  %v2972_v13 = vadd.f32 %v2964_v32, %v2956_v7  ;;  %v2967_v37 = vmul.f32 %v2951_v14, %v4522_v26  ;;  %v2958_v38 = vmul.f32 %v4519_v24, %v2887_v10  ;;  %v3154_v10 = vpop.permute.xlu0 %3153 }
0x1b38   :  { %v3056_v60 = vmul.f32 %v3033_v43, %v2968_v11  ;;  %v3057_v17 = vmul.f32 %v3035_v9, %v2969_v16  ;;  %v3058_v35 = vmul.f32 %v3037_v50, %v2970_v19  ;;  %v3059_v31 = vmul.f32 %v3039_v3, %v2971_v5 }
0x1b39   :  { %v2973_v27 = vadd.f32 %v2965_v25, %v2957_v33  ;;  %v3060_v48 = vmul.f32 %v3041_v20, %v2972_v13  ;;  %v2959_v36 = vmul.f32 %v4519_v24, %v2888_v39  ;;  %v2974_v41 = vadd.f32 %v2966_v34, %v2958_v38  ;;  %v3047_v22 = vpop.permute.xlu1 %3046 }
0x1b3a   :  { %v3064_v15 = vsel %vm565_vm3, %v3056_v60, 0.0  ;;  %v3065_v40 = vsel %vm565_vm3, %v3057_v17, 0.0  ;;  %v3067_v29 = vsel %vm565_vm3, %v3058_v35, 0.0  ;;  %v3069_v6 = vsel %vm565_vm3, %v3059_v31, 0.0 }
0x1b3b   :  { %v3066_v44 = vadd.f32 %v3065_v40, %v3064_v15  ;;  %v3061_v26 = vmul.f32 %v3043_v47, %v2973_v27  ;;  %v2975_v43 = vadd.f32 %v2967_v37, %v2959_v36  ;;  %v3071_v45 = vsel %vm565_vm3, %v3060_v48, 0.0 }
0x1b3c   :  { %v3062_v12 = vmul.f32 %v3045_v63, %v2974_v41  ;;  %v3176_v4 = vsub.s32 6, %v4064_v18 }
0x1b3d   :  { %v3068_v46 = vadd.f32 %v3067_v29, %v3066_v44  ;;  %v3073_v53 = vsel %vm565_vm3, %v3061_v26, 0.0  ;;  %v3063_v49 = vmul.f32 %v3047_v22, %v2975_v43  ;;  %v3158_v9 = vpop.permute.xlu1 %3157 }
0x1b3e   :  { %v3075_v62 = vsel %vm565_vm3, %v3062_v12, 0.0  ;;  %v3160_v51 = vmul.f32 %v3158_v9, %v4463_v52  ;;  %v3177_v23 = vrot.slane %v4470_v0, %v3176_v4 }
0x1b3f   :  { %v3070_v59 = vadd.f32 %v3069_v6, %v3068_v46  ;;  %v3077_v57 = vsel %vm565_vm3, %v3063_v49, 0.0 }
0x1b41   :  { %v3072_v50 = vadd.f32 %v3071_v45, %v3070_v59 }
0x1b43   :  { %v3074_v42 = vadd.f32 %v3073_v53, %v3072_v50 }
0x1b45   :  { %v3076_v24 = vadd.f32 %v3075_v62, %v3074_v42 }
0x1b47   :  { %v3078_v58 = vadd.f32 %v3077_v57, %v3076_v24 }
0x1b49   :  { %3672 = vmatmul.mubr.msk.f32.vlgmr.msra.gmra.mrb[26].mxu1 %vm151_vm2, %v3078_v58 }
0x1c1c   :  { %v3148_v1 = vpop.f32.mrb[26].mxu1 }
0x1c1d   :  { %v3156_v2 = vadd.f32 %v3154_v10, %v3148_v1  ;;  %v3673_v54 = vpop.f32.mrb[27].mxu1 }
0x1c1f   :  { %v3161_v30 = vmul.f32 %v3156_v2, %v4070_v21 }
0x1c21   :  { %3163 = vrot.lane.b32.xlu0 %v3161_v30, %s4013_s0 }
0x1c93   :  { %v3164_v61 = vpop.permute.xlu0 %3163 }
0x1c94   :  { %v3166_v8 = vadd.f32 %v3164_v61, %v3160_v51 }
0x1c96   :  { %3168 = vrot.lane.b32.xlu1 %v3166_v8, %s4014_s1 }
0x1d08   :  { %v3169_v55 = vpop.permute.xlu1 %3168 }
0x1d09   :  { %v3171_v56 = vsel %vm565_vm3, %v3169_v55, 0.0 }
0x1d0a   :  { %3172 = vadd.xlane.f32.xlu0 %v3171_v56 }
0x1d97   :  { %v3173_v28 = vpop.xlane.xlu0 %3172 }
0x1d98   :  { %v3178_v21 = vadd.f32 %v3177_v23, %v3173_v28 }
0x1d9a   :  { %3180 = vst.msk [vmem:[%s4705_s2] sm:$0x3] %vm3179_vm6, %v3178_v21 }
0x1d9b   :  { %3185 = vsyncpa [#allocation4], 1 }

</bundles_post_ra>
